<compile_context>
chip_gen: v7x
topology: tpu7x:2x2x1
jax: 0.10.0
libtpu: 0.0.40
codegen_flags: <defaults>
</compile_context>

<pallas_src>
import functools

import jax
import jax.numpy as jnp
from jax.experimental import pallas as pl
from jax.experimental.pallas import tpu as pltpu


def _round_up(x, m):
    return ((x + m - 1) // m) * m


def _pick_tile(dim, quantum, cap):
    """Largest multiple of `quantum` that divides `dim` and is <= cap (>= quantum).

    `dim` is always a multiple of `quantum` here, so the result exactly divides
    the (already 128/8-padded) dimension -> no extra padding from tiling.
    """
    cap = max(quantum, min(cap, dim))
    best = quantum
    t = quantum
    while t <= cap:
        if dim % t == 0:
            best = t
        t += quantum
    return best


def _query_vmem_limit_bytes():
    # ~48 MiB on v7x (64 MiB physical), ~96 MiB on v5e/v6e (128 MiB physical).
    try:
        cap = getattr(pltpu.get_tpu_info(), "vmem_capacity_bytes", None)
        if cap:
            return int(min(cap * 3 // 4, 100 * 1024 * 1024))
    except Exception:
        pass
    return 48 * 1024 * 1024


_VMEM_LIMIT_BYTES = _query_vmem_limit_bytes()


# --------------------------------------------------------------------------- #
# Kernel 1: weight expansion  Wt[i_tile] = sum_b coeffs[b] * basis_t[b, i_tile]
#   grid = (Din tiles [parallel], n_basis chunks [arbitrary/reduction])
#   f32 VMEM accumulator; result stored in compute_dtype at the last chunk.
# --------------------------------------------------------------------------- #
def _expand_kernel(coeffs_ref, basis_ref, wt_ref, acc_ref, *, bk):
    k = pl.program_id(1)

    @pl.when(k == 0)
    def _():
        acc_ref[...] = jnp.zeros_like(acc_ref)

    acc = acc_ref[...]
    base = k * bk
    for b in range(bk):                               # static unroll; bk <= 32
        c = coeffs_ref[base + b]                      # f32 scalar from SMEM
        acc = acc + c * basis_ref[b].astype(jnp.float32)
    acc_ref[...] = acc

    @pl.when(k == pl.num_programs(1) - 1)
    def _():
        wt_ref[...] = acc_ref[...].astype(wt_ref.dtype)


# --------------------------------------------------------------------------- #
# Kernel 2: hot path  y = x @ Wt + bias  (Identity activation)
#   grid = (outer, inner, K) with K-tiling and an f32 accumulator scratch.
# --------------------------------------------------------------------------- #
def _linear_kernel(x_ref, wt_ref, bias_ref, y_ref, acc_ref):
    k = pl.program_id(2)

    @pl.when(k == 0)
    def _():
        acc_ref[...] = jnp.zeros_like(acc_ref)

    acc_ref[...] += jnp.dot(x_ref[...], wt_ref[...],
                            preferred_element_type=jnp.float32)

    @pl.when(k == pl.num_programs(2) - 1)
    def _():
        y_ref[...] = (acc_ref[...] + bias_ref[...]).astype(y_ref.dtype)


# --------------------------------------------------------------------------- #
# Forward wrapper (jitted). Only tiny per-call prep; the big basis is prepared
# once at module init (EquivariantBlockPallas.__init__).
# --------------------------------------------------------------------------- #
@functools.partial(jax.jit, static_argnames=("dout",))
def _forward(x, basis_coeffs, bias_coeffs, basis_t, bias_basis_p, *, dout):
    f32 = jnp.float32
    cdtype = basis_t.dtype
    itemsize = jnp.dtype(cdtype).itemsize
    B, Din = x.shape
    nb_p, Din_p, Dout_p = basis_t.shape
    n_basis = basis_coeffs.shape[-1]
    B_p = _round_up(B, 8)
    vmem_limit = _VMEM_LIMIT_BYTES

    # ---- tiny per-call prep (never touches the large basis tensor) ----
    coeffs = jnp.pad(basis_coeffs.reshape(-1).astype(f32), (0, nb_p - n_basis))
    bias = jnp.dot(bias_coeffs.astype(f32), bias_basis_p)            # (1, Dout_p)
    x_p = jnp.pad(x, ((0, B_p - B), (0, Din_p - Din))).astype(cdtype)

    # ---- kernel 1: Wt (Din_p, Dout_p) = sum_b coeffs[b] * basis_t[b] ----
    ti_cap = max(8, min(512, ((vmem_limit // 8) // (Dout_p * 4)) // 8 * 8))
    ti = _pick_tile(Din_p, 8, ti_cap)
    bk_cap = max(8, (vmem_limit // 3) // max(1, 2 * ti * Dout_p * itemsize))
    bk = _pick_tile(nb_p, 8, min(32, bk_cap))
    # TODO(synk): for extreme Dout (a ti=8 block still exceeding the VMEM budget)
    # the expansion would additionally need a Dout tiling axis.

    wt = pl.pallas_call(
        functools.partial(_expand_kernel, bk=bk),
        grid=(Din_p // ti, nb_p // bk),
        in_specs=[
            pl.BlockSpec(memory_space=pltpu.MemorySpace.SMEM),       # f32 coeffs
            pl.BlockSpec((bk, ti, Dout_p), lambda i, k: (k, i, 0)),  # basis chunk
        ],
        out_specs=pl.BlockSpec((ti, Dout_p), lambda i, k: (i, 0)),   # resident over k
        out_shape=jax.ShapeDtypeStruct((Din_p, Dout_p), cdtype),
        scratch_shapes=[pltpu.VMEM((ti, Dout_p), f32)],
        compiler_params=pltpu.CompilerParams(
            dimension_semantics=("parallel", "arbitrary"),
            vmem_limit_bytes=vmem_limit,
        ),
    )(coeffs, basis_t)

    # ---- kernel 2: y = x @ Wt + bias over (batch, out, K) tiles ----
    TB = _pick_tile(B_p, 8, 512)
    TN = _pick_tile(Dout_p, 128, 512)
    TK = _pick_tile(Din_p, 128, 1024)
    ni, nj, nk = B_p // TB, Dout_p // TN, Din_p // TK

    # Grid order: keep the larger of {Wt, x} as the operand that is fetched once
    # (its block index is constant across the inner axis when nk == 1).
    if Din_p * Dout_p >= B_p * Din_p:                 # Wt bytes >= x bytes
        grid = (nj, ni, nk)
        x_map, wt_map = (lambda j, i, k: (i, k)), (lambda j, i, k: (k, j))
        b_map, y_map = (lambda j, i, k: (0, j)), (lambda j, i, k: (i, j))
    else:
        grid = (ni, nj, nk)
        x_map, wt_map = (lambda i, j, k: (i, k)), (lambda i, j, k: (k, j))
        b_map, y_map = (lambda i, j, k: (0, j)), (lambda i, j, k: (i, j))

    y_p = pl.pallas_call(
        _linear_kernel,
        grid=grid,
        in_specs=[
            pl.BlockSpec((TB, TK), x_map),
            pl.BlockSpec((TK, TN), wt_map),
            pl.BlockSpec((1, TN), b_map),
        ],
        out_specs=pl.BlockSpec((TB, TN), y_map),
        out_shape=jax.ShapeDtypeStruct((B_p, Dout_p), x.dtype),
        scratch_shapes=[pltpu.VMEM((TB, TN), f32)],
        compiler_params=pltpu.CompilerParams(
            dimension_semantics=("parallel", "parallel", "arbitrary"),
            vmem_limit_bytes=vmem_limit,
        ),
    )(x_p, wt, bias)

    return y_p[:B, :dout]


class EquivariantBlockPallas:
    """Pallas port of EquivariantBlock(rep_in, rep_out, with_bias=True,
    activation=Identity) — forward pass only.

    The fixed equivariant basis tensors are prepared ONCE here (transpose to
    (n_basis, Din, Dout), pad to lane/sublane multiples, cast to compute_dtype),
    so the per-call forward path makes no extra HBM passes over the basis.
    """

    def __init__(self, basis, bias_basis, compute_dtype=jnp.bfloat16):
        # TODO(synk): the group-equivariant basis construction and the init-time
        # equivariance self-test (EquivariantModel.test_module_equivariance) are
        # rep-dependent glue with no kernel equivalent; the basis is taken as given.
        n_basis, Dout, Din = (int(s) for s in basis.shape)
        self.Din, self.Dout = Din, Dout
        self.Din_p = _round_up(Din, 128)
        self.Dout_p = _round_up(Dout, 128)
        self.nb_p = _round_up(n_basis, 8)
        cdtype = jnp.dtype(compute_dtype)

        basis_t = jnp.transpose(basis, (0, 2, 1))                    # (n_basis, Din, Dout)
        basis_t = jnp.pad(basis_t, ((0, self.nb_p - n_basis),
                                    (0, self.Din_p - Din),
                                    (0, self.Dout_p - Dout)))
        self.basis_t = basis_t.astype(cdtype)
        self.bias_basis_p = jnp.pad(bias_basis.astype(jnp.float32),
                                    ((0, 0), (0, self.Dout_p - Dout)))

    def __call__(self, x, basis_coeffs, bias_coeffs):
        return _forward(x, basis_coeffs, bias_coeffs,
                        self.basis_t, self.bias_basis_p, dout=self.Dout)


def reference(x, basis_coeffs, basis, bias_coeffs, bias_basis):
    W = jnp.tensordot(basis_coeffs[0], basis, axes=1)      # (out_dim, in_dim)
    b = jnp.tensordot(bias_coeffs[0], bias_basis, axes=1)  # (out_dim,)
    return x @ W.T + b                                     # Identity activation


if __name__ == "__main__":
    # Small shapes consistent with an equivariant MLP block.
    B, Din, Dout = 8, 32, 32
    n_basis, n_bias_basis = 16, 4

    key = jax.random.PRNGKey(0)
    kx, kb, kc, kbb, kbc = jax.random.split(key, 5)

    x = jax.random.normal(kx, (B, Din), dtype=jnp.float32)
    basis        = jax.random.normal(kb,  (n_basis, Dout, Din), dtype=jnp.float32) / jnp.sqrt(Din)
    basis_coeffs = jax.random.normal(kc,  (1, n_basis),         dtype=jnp.float32) / jnp.sqrt(n_basis)
    bias_basis   = jax.random.normal(kbb, (n_bias_basis, Dout), dtype=jnp.float32)
    bias_coeffs  = jax.random.normal(kbc, (1, n_bias_basis),    dtype=jnp.float32) / jnp.sqrt(n_bias_basis)

    y_ref = reference(x, basis_coeffs, basis, bias_coeffs, bias_basis)

    # Exact-parity path (f32 streaming).
    block_f32 = EquivariantBlockPallas(basis, bias_basis, compute_dtype=jnp.float32)
    y = jax.block_until_ready(block_f32(x, basis_coeffs, bias_coeffs))
    assert y.shape == (B, Dout)
    assert jnp.allclose(y, y_ref, atol=1e-4, rtol=1e-4), "f32 mismatch vs reference"

    # Default bf16 streaming path (f32 accumulation, f32 coefficients / bias).
    block_bf16 = EquivariantBlockPallas(basis, bias_basis)
    y16 = jax.block_until_ready(block_bf16(x, basis_coeffs, bias_coeffs))
    assert y16.shape == (B, Dout)
    assert jnp.allclose(y16, y_ref, atol=5e-2, rtol=5e-2), "bf16 mismatch vs reference"

    print("KERNEL_OK")
</pallas_src>

<mosaic_0001>
module attributes {stable_mosaic.version = 11 : i64} {
  func.func @_expand_kernel(%arg0: i32, %arg1: i32, %arg2: memref<16xf32, #tpu.memory_space<smem>>, %arg3: memref<16x128x128xf32, #tpu.memory_space<vmem>>, %arg4: memref<128x128xf32, #tpu.memory_space<vmem>>, %arg5: memref<128x128xf32, #tpu.memory_space<vmem>>) attributes {dimension_semantics = [#tpu.dimension_semantics<parallel>, #tpu.dimension_semantics<arbitrary>], iteration_bounds = array<i64: 1, 1>, scalar_prefetch = 0 : i64, scratch_operands = 1 : i64, tpu.core_type = #tpu.core_type<tc>, window_params = [{transform_indices = @transform_0, window_bounds = array<i64: 16>}, {transform_indices = @transform_1, window_bounds = array<i64: 16, 128, 128>}, {transform_indices = @transform_2, window_bounds = array<i64: 128, 128>}]} {
    %c0_i32 = arith.constant 0 : i32
    %0 = arith.cmpi eq, %arg1, %c0_i32 : i32
    %1 = arith.extui %0 : i1 to i32
    %c0_i32_0 = arith.constant 0 : i32
    %2 = arith.cmpi ne, %1, %c0_i32_0 : i32
    scf.if %2 {
      %cst = arith.constant 0.000000e+00 : f32
      %137 = vector.broadcast %cst : f32 to vector<128x128xf32>
      %c0_40 = arith.constant 0 : index
      %c0_41 = arith.constant 0 : index
      %138 = vector.load %arg5[%c0_40, %c0_41] : memref<128x128xf32, #tpu.memory_space<vmem>>, vector<128x128xf32>
      tpu.vector_store %arg5[%c0_40, %c0_41], %137 {strides = array<i32>} : memref<128x128xf32, #tpu.memory_space<vmem>>, vector<128x128xf32>,
    } else {
    }
    %c0 = arith.constant 0 : index
    %c0_1 = arith.constant 0 : index
    %3 = vector.load %arg5[%c0, %c0_1] : memref<128x128xf32, #tpu.memory_space<vmem>>, vector<128x128xf32>
    %c16_i32 = arith.constant 16 : i32
    %4 = arith.muli %arg1, %c16_i32 : i32
    %c0_i32_2 = arith.constant 0 : i32
    %5 = arith.addi %4, %c0_i32_2 : i32
    %6 = arith.index_cast %5 : i32 to index
    %7 = memref.load %arg2[%6] : memref<16xf32, #tpu.memory_space<smem>>
    %c0_3 = arith.constant 0 : index
    %c0_4 = arith.constant 0 : index
    %c0_5 = arith.constant 0 : index
    %8 = vector.load %arg3[%c0_3, %c0_4, %c0_5] : memref<16x128x128xf32, #tpu.memory_space<vmem>>, vector<1x128x128xf32>
    %9 = vector.shape_cast %8 : vector<1x128x128xf32> to vector<128x128xf32>
    %10 = vector.broadcast %7 : f32 to vector<128x128xf32>
    %11 = arith.mulf %10, %9 : vector<128x128xf32>
    %12 = arith.addf %3, %11 : vector<128x128xf32>
    %c1_i32 = arith.constant 1 : i32
    %13 = arith.addi %4, %c1_i32 : i32
    %14 = arith.index_cast %13 : i32 to index
    %15 = memref.load %arg2[%14] : memref<16xf32, #tpu.memory_space<smem>>
    %c1 = arith.constant 1 : index
    %c0_6 = arith.constant 0 : index
    %c0_7 = arith.constant 0 : index
    %16 = vector.load %arg3[%c1, %c0_6, %c0_7] : memref<16x128x128xf32, #tpu.memory_space<vmem>>, vector<1x128x128xf32>
    %17 = vector.shape_cast %16 : vector<1x128x128xf32> to vector<128x128xf32>
    %18 = vector.broadcast %15 : f32 to vector<128x128xf32>
    %19 = arith.mulf %18, %17 : vector<128x128xf32>
    %20 = arith.addf %12, %19 : vector<128x128xf32>
    %c2_i32 = arith.constant 2 : i32
    %21 = arith.addi %4, %c2_i32 : i32
    %22 = arith.index_cast %21 : i32 to index
    %23 = memref.load %arg2[%22] : memref<16xf32, #tpu.memory_space<smem>>
    %c2 = arith.constant 2 : index
    %c0_8 = arith.constant 0 : index
    %c0_9 = arith.constant 0 : index
    %24 = vector.load %arg3[%c2, %c0_8, %c0_9] : memref<16x128x128xf32, #tpu.memory_space<vmem>>, vector<1x128x128xf32>
    %25 = vector.shape_cast %24 : vector<1x128x128xf32> to vector<128x128xf32>
    %26 = vector.broadcast %23 : f32 to vector<128x128xf32>
    %27 = arith.mulf %26, %25 : vector<128x128xf32>
    %28 = arith.addf %20, %27 : vector<128x128xf32>
    %c3_i32 = arith.constant 3 : i32
    %29 = arith.addi %4, %c3_i32 : i32
    %30 = arith.index_cast %29 : i32 to index
    %31 = memref.load %arg2[%30] : memref<16xf32, #tpu.memory_space<smem>>
    %c3 = arith.constant 3 : index
    %c0_10 = arith.constant 0 : index
    %c0_11 = arith.constant 0 : index
    %32 = vector.load %arg3[%c3, %c0_10, %c0_11] : memref<16x128x128xf32, #tpu.memory_space<vmem>>, vector<1x128x128xf32>
    %33 = vector.shape_cast %32 : vector<1x128x128xf32> to vector<128x128xf32>
    %34 = vector.broadcast %31 : f32 to vector<128x128xf32>
    %35 = arith.mulf %34, %33 : vector<128x128xf32>
    %36 = arith.addf %28, %35 : vector<128x128xf32>
    %c4_i32 = arith.constant 4 : i32
    %37 = arith.addi %4, %c4_i32 : i32
    %38 = arith.index_cast %37 : i32 to index
    %39 = memref.load %arg2[%38] : memref<16xf32, #tpu.memory_space<smem>>
    %c4 = arith.constant 4 : index
    %c0_12 = arith.constant 0 : index
    %c0_13 = arith.constant 0 : index
    %40 = vector.load %arg3[%c4, %c0_12, %c0_13] : memref<16x128x128xf32, #tpu.memory_space<vmem>>, vector<1x128x128xf32>
    %41 = vector.shape_cast %40 : vector<1x128x128xf32> to vector<128x128xf32>
    %42 = vector.broadcast %39 : f32 to vector<128x128xf32>
    %43 = arith.mulf %42, %41 : vector<128x128xf32>
    %44 = arith.addf %36, %43 : vector<128x128xf32>
    %c5_i32 = arith.constant 5 : i32
    %45 = arith.addi %4, %c5_i32 : i32
    %46 = arith.index_cast %45 : i32 to index
    %47 = memref.load %arg2[%46] : memref<16xf32, #tpu.memory_space<smem>>
    %c5 = arith.constant 5 : index
    %c0_14 = arith.constant 0 : index
    %c0_15 = arith.constant 0 : index
    %48 = vector.load %arg3[%c5, %c0_14, %c0_15] : memref<16x128x128xf32, #tpu.memory_space<vmem>>, vector<1x128x128xf32>
    %49 = vector.shape_cast %48 : vector<1x128x128xf32> to vector<128x128xf32>
    %50 = vector.broadcast %47 : f32 to vector<128x128xf32>
    %51 = arith.mulf %50, %49 : vector<128x128xf32>
    %52 = arith.addf %44, %51 : vector<128x128xf32>
    %c6_i32 = arith.constant 6 : i32
    %53 = arith.addi %4, %c6_i32 : i32
    %54 = arith.index_cast %53 : i32 to index
    %55 = memref.load %arg2[%54] : memref<16xf32, #tpu.memory_space<smem>>
    %c6 = arith.constant 6 : index
    %c0_16 = arith.constant 0 : index
    %c0_17 = arith.constant 0 : index
    %56 = vector.load %arg3[%c6, %c0_16, %c0_17] : memref<16x128x128xf32, #tpu.memory_space<vmem>>, vector<1x128x128xf32>
    %57 = vector.shape_cast %56 : vector<1x128x128xf32> to vector<128x128xf32>
    %58 = vector.broadcast %55 : f32 to vector<128x128xf32>
    %59 = arith.mulf %58, %57 : vector<128x128xf32>
    %60 = arith.addf %52, %59 : vector<128x128xf32>
    %c7_i32 = arith.constant 7 : i32
    %61 = arith.addi %4, %c7_i32 : i32
    %62 = arith.index_cast %61 : i32 to index
    %63 = memref.load %arg2[%62] : memref<16xf32, #tpu.memory_space<smem>>
    %c7 = arith.constant 7 : index
    %c0_18 = arith.constant 0 : index
    %c0_19 = arith.constant 0 : index
    %64 = vector.load %arg3[%c7, %c0_18, %c0_19] : memref<16x128x128xf32, #tpu.memory_space<vmem>>, vector<1x128x128xf32>
    %65 = vector.shape_cast %64 : vector<1x128x128xf32> to vector<128x128xf32>
    %66 = vector.broadcast %63 : f32 to vector<128x128xf32>
    %67 = arith.mulf %66, %65 : vector<128x128xf32>
    %68 = arith.addf %60, %67 : vector<128x128xf32>
    %c8_i32 = arith.constant 8 : i32
    %69 = arith.addi %4, %c8_i32 : i32
    %70 = arith.index_cast %69 : i32 to index
    %71 = memref.load %arg2[%70] : memref<16xf32, #tpu.memory_space<smem>>
    %c8 = arith.constant 8 : index
    %c0_20 = arith.constant 0 : index
    %c0_21 = arith.constant 0 : index
    %72 = vector.load %arg3[%c8, %c0_20, %c0_21] : memref<16x128x128xf32, #tpu.memory_space<vmem>>, vector<1x128x128xf32>
    %73 = vector.shape_cast %72 : vector<1x128x128xf32> to vector<128x128xf32>
    %74 = vector.broadcast %71 : f32 to vector<128x128xf32>
    %75 = arith.mulf %74, %73 : vector<128x128xf32>
    %76 = arith.addf %68, %75 : vector<128x128xf32>
    %c9_i32 = arith.constant 9 : i32
    %77 = arith.addi %4, %c9_i32 : i32
    %78 = arith.index_cast %77 : i32 to index
    %79 = memref.load %arg2[%78] : memref<16xf32, #tpu.memory_space<smem>>
    %c9 = arith.constant 9 : index
    %c0_22 = arith.constant 0 : index
    %c0_23 = arith.constant 0 : index
    %80 = vector.load %arg3[%c9, %c0_22, %c0_23] : memref<16x128x128xf32, #tpu.memory_space<vmem>>, vector<1x128x128xf32>
    %81 = vector.shape_cast %80 : vector<1x128x128xf32> to vector<128x128xf32>
    %82 = vector.broadcast %79 : f32 to vector<128x128xf32>
    %83 = arith.mulf %82, %81 : vector<128x128xf32>
    %84 = arith.addf %76, %83 : vector<128x128xf32>
    %c10_i32 = arith.constant 10 : i32
    %85 = arith.addi %4, %c10_i32 : i32
    %86 = arith.index_cast %85 : i32 to index
    %87 = memref.load %arg2[%86] : memref<16xf32, #tpu.memory_space<smem>>
    %c10 = arith.constant 10 : index
    %c0_24 = arith.constant 0 : index
    %c0_25 = arith.constant 0 : index
    %88 = vector.load %arg3[%c10, %c0_24, %c0_25] : memref<16x128x128xf32, #tpu.memory_space<vmem>>, vector<1x128x128xf32>
    %89 = vector.shape_cast %88 : vector<1x128x128xf32> to vector<128x128xf32>
    %90 = vector.broadcast %87 : f32 to vector<128x128xf32>
    %91 = arith.mulf %90, %89 : vector<128x128xf32>
    %92 = arith.addf %84, %91 : vector<128x128xf32>
    %c11_i32 = arith.constant 11 : i32
    %93 = arith.addi %4, %c11_i32 : i32
    %94 = arith.index_cast %93 : i32 to index
    %95 = memref.load %arg2[%94] : memref<16xf32, #tpu.memory_space<smem>>
    %c11 = arith.constant 11 : index
    %c0_26 = arith.constant 0 : index
    %c0_27 = arith.constant 0 : index
    %96 = vector.load %arg3[%c11, %c0_26, %c0_27] : memref<16x128x128xf32, #tpu.memory_space<vmem>>, vector<1x128x128xf32>
    %97 = vector.shape_cast %96 : vector<1x128x128xf32> to vector<128x128xf32>
    %98 = vector.broadcast %95 : f32 to vector<128x128xf32>
    %99 = arith.mulf %98, %97 : vector<128x128xf32>
    %100 = arith.addf %92, %99 : vector<128x128xf32>
    %c12_i32 = arith.constant 12 : i32
    %101 = arith.addi %4, %c12_i32 : i32
    %102 = arith.index_cast %101 : i32 to index
    %103 = memref.load %arg2[%102] : memref<16xf32, #tpu.memory_space<smem>>
    %c12 = arith.constant 12 : index
    %c0_28 = arith.constant 0 : index
    %c0_29 = arith.constant 0 : index
    %104 = vector.load %arg3[%c12, %c0_28, %c0_29] : memref<16x128x128xf32, #tpu.memory_space<vmem>>, vector<1x128x128xf32>
    %105 = vector.shape_cast %104 : vector<1x128x128xf32> to vector<128x128xf32>
    %106 = vector.broadcast %103 : f32 to vector<128x128xf32>
    %107 = arith.mulf %106, %105 : vector<128x128xf32>
    %108 = arith.addf %100, %107 : vector<128x128xf32>
    %c13_i32 = arith.constant 13 : i32
    %109 = arith.addi %4, %c13_i32 : i32
    %110 = arith.index_cast %109 : i32 to index
    %111 = memref.load %arg2[%110] : memref<16xf32, #tpu.memory_space<smem>>
    %c13 = arith.constant 13 : index
    %c0_30 = arith.constant 0 : index
    %c0_31 = arith.constant 0 : index
    %112 = vector.load %arg3[%c13, %c0_30, %c0_31] : memref<16x128x128xf32, #tpu.memory_space<vmem>>, vector<1x128x128xf32>
    %113 = vector.shape_cast %112 : vector<1x128x128xf32> to vector<128x128xf32>
    %114 = vector.broadcast %111 : f32 to vector<128x128xf32>
    %115 = arith.mulf %114, %113 : vector<128x128xf32>
    %116 = arith.addf %108, %115 : vector<128x128xf32>
    %c14_i32 = arith.constant 14 : i32
    %117 = arith.addi %4, %c14_i32 : i32
    %118 = arith.index_cast %117 : i32 to index
    %119 = memref.load %arg2[%118] : memref<16xf32, #tpu.memory_space<smem>>
    %c14 = arith.constant 14 : index
    %c0_32 = arith.constant 0 : index
    %c0_33 = arith.constant 0 : index
    %120 = vector.load %arg3[%c14, %c0_32, %c0_33] : memref<16x128x128xf32, #tpu.memory_space<vmem>>, vector<1x128x128xf32>
    %121 = vector.shape_cast %120 : vector<1x128x128xf32> to vector<128x128xf32>
    %122 = vector.broadcast %119 : f32 to vector<128x128xf32>
    %123 = arith.mulf %122, %121 : vector<128x128xf32>
    %124 = arith.addf %116, %123 : vector<128x128xf32>
    %c15_i32 = arith.constant 15 : i32
    %125 = arith.addi %4, %c15_i32 : i32
    %126 = arith.index_cast %125 : i32 to index
    %127 = memref.load %arg2[%126] : memref<16xf32, #tpu.memory_space<smem>>
    %c15 = arith.constant 15 : index
    %c0_34 = arith.constant 0 : index
    %c0_35 = arith.constant 0 : index
    %128 = vector.load %arg3[%c15, %c0_34, %c0_35] : memref<16x128x128xf32, #tpu.memory_space<vmem>>, vector<1x128x128xf32>
    %129 = vector.shape_cast %128 : vector<1x128x128xf32> to vector<128x128xf32>
    %130 = vector.broadcast %127 : f32 to vector<128x128xf32>
    %131 = arith.mulf %130, %129 : vector<128x128xf32>
    %132 = arith.addf %124, %131 : vector<128x128xf32>
    %c0_36 = arith.constant 0 : index
    %c0_37 = arith.constant 0 : index
    %133 = vector.load %arg5[%c0_36, %c0_37] : memref<128x128xf32, #tpu.memory_space<vmem>>, vector<128x128xf32>
    tpu.vector_store %arg5[%c0_36, %c0_37], %132 {strides = array<i32>} : memref<128x128xf32, #tpu.memory_space<vmem>>, vector<128x128xf32>,
    %c0_i32_38 = arith.constant 0 : i32
    %134 = arith.cmpi eq, %arg1, %c0_i32_38 : i32
    %135 = arith.extui %134 : i1 to i32
    %c0_i32_39 = arith.constant 0 : i32
    %136 = arith.cmpi ne, %135, %c0_i32_39 : i32
    scf.if %136 {
      %c0_40 = arith.constant 0 : index
      %c0_41 = arith.constant 0 : index
      %137 = vector.load %arg5[%c0_40, %c0_41] : memref<128x128xf32, #tpu.memory_space<vmem>>, vector<128x128xf32>
      %c0_42 = arith.constant 0 : index
      %c0_43 = arith.constant 0 : index
      %138 = vector.load %arg4[%c0_42, %c0_43] : memref<128x128xf32, #tpu.memory_space<vmem>>, vector<128x128xf32>
      tpu.vector_store %arg4[%c0_42, %c0_43], %137 {strides = array<i32>} : memref<128x128xf32, #tpu.memory_space<vmem>>, vector<128x128xf32>,
    } else {
    }
    return
  }
  func.func @transform_0(%arg0: i32, %arg1: i32) -> i32 {
    %c0_i32 = arith.constant 0 : i32
    %c0_i32_0 = arith.constant 0 : i32
    return %c0_i32 : i32
  }
  func.func @transform_1(%arg0: i32, %arg1: i32) -> (i32, i32, i32) {
    %c0_i32 = arith.constant 0 : i32
    %c0_i32_0 = arith.constant 0 : i32
    return %arg1, %arg0, %c0_i32 : i32, i32, i32
  }
  func.func @transform_2(%arg0: i32, %arg1: i32) -> (i32, i32) {
    %c0_i32 = arith.constant 0 : i32
    %c0_i32_0 = arith.constant 0 : i32
    return %arg0, %c0_i32 : i32, i32
  }
}

module attributes {stable_mosaic.version = 11 : i64} {
  func.func @_linear_kernel(%arg0: i32, %arg1: i32, %arg2: i32, %arg3: memref<8x128xf32, #tpu.memory_space<vmem>>, %arg4: memref<128x128xf32, #tpu.memory_space<vmem>>, %arg5: memref<1x128xf32, #tpu.memory_space<vmem>>, %arg6: memref<8x128xf32, #tpu.memory_space<vmem>>, %arg7: memref<8x128xf32, #tpu.memory_space<vmem>>) attributes {dimension_semantics = [#tpu.dimension_semantics<parallel>, #tpu.dimension_semantics<parallel>, #tpu.dimension_semantics<arbitrary>], iteration_bounds = array<i64: 1, 1, 1>, scalar_prefetch = 0 : i64, scratch_operands = 1 : i64, tpu.core_type = #tpu.core_type<tc>, window_params = [{transform_indices = @transform_0, window_bounds = array<i64: 8, 128>}, {transform_indices = @transform_1, window_bounds = array<i64: 128, 128>}, {transform_indices = @transform_2, window_bounds = array<i64: 1, 128>}, {transform_indices = @transform_3, window_bounds = array<i64: 8, 128>}]} {
    %c0_i32 = arith.constant 0 : i32
    %0 = arith.cmpi eq, %arg2, %c0_i32 : i32
    %1 = arith.extui %0 : i1 to i32
    %c0_i32_0 = arith.constant 0 : i32
    %2 = arith.cmpi ne, %1, %c0_i32_0 : i32
    scf.if %2 {
      %cst_10 = arith.constant 0.000000e+00 : f32
      %12 = vector.broadcast %cst_10 : f32 to vector<8x128xf32>
      %c0_11 = arith.constant 0 : index
      %c0_12 = arith.constant 0 : index
      %13 = vector.load %arg7[%c0_11, %c0_12] : memref<8x128xf32, #tpu.memory_space<vmem>>, vector<8x128xf32>
      tpu.vector_store %arg7[%c0_11, %c0_12], %12 {strides = array<i32>} : memref<8x128xf32, #tpu.memory_space<vmem>>, vector<8x128xf32>,
    } else {
    }
    %c0 = arith.constant 0 : index
    %c0_1 = arith.constant 0 : index
    %3 = vector.load %arg7[%c0, %c0_1] : memref<8x128xf32, #tpu.memory_space<vmem>>, vector<8x128xf32>
    %c0_2 = arith.constant 0 : index
    %c0_3 = arith.constant 0 : index
    %4 = vector.load %arg3[%c0_2, %c0_3] : memref<8x128xf32, #tpu.memory_space<vmem>>, vector<8x128xf32>
    %c0_4 = arith.constant 0 : index
    %c0_5 = arith.constant 0 : index
    %5 = vector.load %arg4[%c0_4, %c0_5] : memref<128x128xf32, #tpu.memory_space<vmem>>, vector<128x128xf32>
    %cst = arith.constant dense<0.000000e+00> : vector<8x128xf32>
    %6 = tpu.matmul %4, %5, %cst {dimension_numbers = #tpu.dot_dimension_numbers<[1], [0], [0], [1], [0, 0, 1, 1], [], []>} : vector<8x128xf32>, vector<128x128xf32>, vector<8x128xf32> -> vector<8x128xf32>
    %7 = arith.addf %3, %6 : vector<8x128xf32>
    %c0_6 = arith.constant 0 : index
    %c0_7 = arith.constant 0 : index
    %8 = vector.load %arg7[%c0_6, %c0_7] : memref<8x128xf32, #tpu.memory_space<vmem>>, vector<8x128xf32>
    tpu.vector_store %arg7[%c0_6, %c0_7], %7 {strides = array<i32>} : memref<8x128xf32, #tpu.memory_space<vmem>>, vector<8x128xf32>,
    %c0_i32_8 = arith.constant 0 : i32
    %9 = arith.cmpi eq, %arg2, %c0_i32_8 : i32
    %10 = arith.extui %9 : i1 to i32
    %c0_i32_9 = arith.constant 0 : i32
    %11 = arith.cmpi ne, %10, %c0_i32_9 : i32
    scf.if %11 {
      %c0_10 = arith.constant 0 : index
      %c0_11 = arith.constant 0 : index
      %12 = vector.load %arg7[%c0_10, %c0_11] : memref<8x128xf32, #tpu.memory_space<vmem>>, vector<8x128xf32>
      %c0_12 = arith.constant 0 : index
      %c0_13 = arith.constant 0 : index
      %13 = vector.load %arg5[%c0_12, %c0_13] : memref<1x128xf32, #tpu.memory_space<vmem>>, vector<1x128xf32>
      %14 = vector.broadcast %13 : vector<1x128xf32> to vector<8x128xf32>
      %15 = arith.addf %12, %14 : vector<8x128xf32>
      %c0_14 = arith.constant 0 : index
      %c0_15 = arith.constant 0 : index
      %16 = vector.load %arg6[%c0_14, %c0_15] : memref<8x128xf32, #tpu.memory_space<vmem>>, vector<8x128xf32>
      tpu.vector_store %arg6[%c0_14, %c0_15], %15 {strides = array<i32>} : memref<8x128xf32, #tpu.memory_space<vmem>>, vector<8x128xf32>,
    } else {
    }
    return
  }
  func.func @transform_0(%arg0: i32, %arg1: i32, %arg2: i32) -> (i32, i32) {
    %c0_i32 = arith.constant 0 : i32
    return %arg1, %arg2 : i32, i32
  }
  func.func @transform_1(%arg0: i32, %arg1: i32, %arg2: i32) -> (i32, i32) {
    %c0_i32 = arith.constant 0 : i32
    return %arg2, %arg0 : i32, i32
  }
  func.func @transform_2(%arg0: i32, %arg1: i32, %arg2: i32) -> (i32, i32) {
    %c0_i32 = arith.constant 0 : i32
    %c0_i32_0 = arith.constant 0 : i32
    return %c0_i32, %arg0 : i32, i32
  }
  func.func @transform_3(%arg0: i32, %arg1: i32, %arg2: i32) -> (i32, i32) {
    %c0_i32 = arith.constant 0 : i32
    return %arg1, %arg0 : i32, i32
  }
}

</mosaic_0001>

<bundles_post_ra>
// kernel: _forward.3
= control target key start
LH: loop header
LB: loop body
LE: loop exit
PB: predicated region body
PF: predicated region fallthrough
CT: control target
= control target key end

     0   :  { %v242_v3 = vmov 0.0|0.0   ;;  %vm243_vm0 = vmmov 0   ;;  %v244_v6 = vmov 0.0   ;;  %s332_s0 = inlined_call_operand.vmem [shape: f32[8,128], index: 0, kind: input, shape index: {}]   ;;  %s333_s1 = inlined_call_operand.vmem [shape: f32[128,128], index: 1, kind: input, shape index: {}]   ;;  %s334_s2 = inlined_call_operand.vmem [shape: f32[1,128], index: 2, kind: input, shape index: {}]   ;;  %s335_s3 = inlined_call_operand.hbm [shape: f32[8,128], index: 3, kind: output, shape index: {}]  }
   0x1   :  { %v22_v0 = vld [vmem:[%s333_s1] sm:$0xff]  ;;  %v23_v1 = vld [vmem:[%s333_s1 + $0x8] sm:$0xff]  ;;  %v24_v2 = vld [vmem:[%s333_s1 + $0x10] sm:$0xff]  ;;  %190 = vmatprep.subr.bf16.mxu0 %v242_v3  ;;  %187 = vmatprep.mubr.msk.f32.mxu0 %vm243_vm0, %v244_v6 }
   0x2   :  { %v191_v4 = vpack.c.bf16 %v23_v1, %v22_v0  ;;  %v25_v5 = vld [vmem:[%s333_s1 + $0x18] sm:$0xff]  ;;  %v26_v8 = vld [vmem:[%s333_s1 + $0x20] sm:$0xff]  ;;  %v27_v9 = vld [vmem:[%s333_s1 + $0x28] sm:$0xff] }
   0x3   :  { %v194_v7 = vpack.c.bf16 %v25_v5, %v24_v2 }
   0x4   :  { %192 = vmatpush3.bf16.msra.mxu0 %v191_v4 }
   0x5   :  { %193 = vmatprep.subr.bf16.mxu0 %v242_v3 }
   0x6   :  { %8 = vsyncpa [#allocation4], 0  ;;  %v197_v10 = vpack.c.bf16 %v27_v9, %v26_v8  ;;  %v28_v11 = vld [vmem:[%s333_s1 + $0x30] sm:$0xff]  ;;  %v29_v12 = vld [vmem:[%s333_s1 + $0x38] sm:$0xff]  ;;  %s245_s21 = smov [#allocation3]  }
   0x7   :  { %v200_v13 = vpack.c.bf16 %v29_v12, %v28_v11  ;;  %v30_v14 = vld [vmem:[%s333_s1 + $0x40] sm:$0xff]  ;;  %v31_v15 = vld [vmem:[%s333_s1 + $0x48] sm:$0xff]  ;;  %v32_v17 = vld [vmem:[%s333_s1 + $0x50] sm:$0xff]  ;;  %s129_s22 = sshll.u32 %s245_s21, 4  ;;  %s130_s22 = int_to_ptr.vmem [resolvable:$true] %s129_s22 }
   0x8   :  { %195 = vmatpush3.bf16.msra.mxu0 %v194_v7  ;;  %v203_v16 = vpack.c.bf16 %v31_v15, %v30_v14  ;;  %v33_v18 = vld [vmem:[%s333_s1 + $0x58] sm:$0xff]  ;;  %v34_v20 = vld [vmem:[%s333_s1 + $0x60] sm:$0xff]  ;;  %v35_v21 = vld [vmem:[%s333_s1 + $0x68] sm:$0xff]  ;;  %p223_p1 = scmp.lt.s32.totalorder %s130_s22, %s130_s22 }
   0x9   :  { %196 = vmatprep.subr.bf16.mxu0 %v242_v3  ;;  %v206_v19 = vpack.c.bf16 %v33_v18, %v32_v17  ;;  %v209_v22 = vpack.c.bf16 %v35_v21, %v34_v20  ;;  %v36_v23 = vld [vmem:[%s333_s1 + $0x70] sm:$0xff]  ;;  %v37_v24 = vld [vmem:[%s333_s1 + $0x78] sm:$0xff]  ;;  %v21_v26 = vld [vmem:[%s332_s0] sm:$0xff]  ;;  %s218_s1 = scalar_lea.vmem %s130_s22, 128 }
   0xa   :  { %v212_v25 = vpack.c.bf16 %v37_v24, %v36_v23  ;;  %v137_v27 = vld [vmem:[%s334_s2] ss:$0 sm:$0xff]  ;;  %p219_p0 = scmp.ne.s32.totalorder %s130_s22, %s218_s1  ;;  %p224_p2 = scmp.lt.s32.totalorder %s218_s1, %s218_s1 }
   0xc   :  { %198 = vmatpush3.bf16.msra.mxu0 %v197_v10  ;;  %p225_p3 = por %p224_p2, %p223_p1 }
   0xd   :  { %199 = vmatprep.subr.bf16.mxu0 %v242_v3 }
   0xe   :  { %p226_p4 = pnand %p225_p3, %p219_p0 }
  0x10   :  { %201 = vmatpush3.bf16.msra.mxu0 %v200_v13 }
  0x11   :  { %202 = vmatprep.subr.bf16.mxu0 %v242_v3 }
  0x14   :  { %204 = vmatpush3.bf16.msra.mxu0 %v203_v16 }
  0x15   :  { %205 = vmatprep.subr.bf16.mxu0 %v242_v3 }
  0x18   :  { %207 = vmatpush3.bf16.msra.mxu0 %v206_v19 }
  0x19   :  { %208 = vmatprep.subr.bf16.mxu0 %v242_v3 }
  0x1c   :  { %210 = vmatpush3.bf16.msra.mxu0 %v209_v22 }
  0x1d   :  { %211 = vmatprep.subr.bf16.mxu0 %v242_v3 }
  0x20   :  { %213 = vmatpush3.bf16.msra.mxu0 %v212_v25 }
  0x23   :  { %188 = vmatmul.mubr.f32.vlgmr.msra.gmra.mrb[0].mxu0 %v21_v26 }
  0xf6   :  { %v104_v28 = vpop.f32.mrb[0].mxu0 }
  0xf7   :  { %v121_v29 = vadd.f32 %v137_v27, %v104_v28  ;;  %v189_v30 = vpop.f32.mrb[1].mxu0 }
  0xf9   :  { %122 = vst [vmem:[#allocation3] sm:$0xff] %v121_v29 }
  0xfa   :  { %229 = shalt.err (!%p226_p4)
}
  0xfb   :  { %s230_s24 = scalar_lea.hbm %s335_s3, 128 }
  0xfc   :  { %p231_p5 = scmp.ne.s32.totalorder %s335_s3, %s230_s24  ;;  %p234_p6 = scmp.lt.u32.totalorder %s230_s24, %s335_s3 }
  0xfe   :  { %p236_p7 = pnand %p234_p6, %p231_p5 }
 0x100   :  { %239 = shalt.err (!%p236_p7)
}
 0x101   :  { %132 = dma.vmem_to_hbm [thread:$0]  %s130_s22, 128, %s335_s3, [#allocation4]  }
 0x102   :  { %240 = dma.done.wait [#allocation4], 128  }
 0x103   :  { %241 = vsyncadd [#allocation4], 4294967168 }
 0x104   :  { %136 = vsyncpa [#allocation4], 1 }

// kernel: _forward.2
= control target key start
LH: loop header
LB: loop body
LE: loop exit
PB: predicated region body
PF: predicated region fallthrough
CT: control target
= control target key end

     0   :  { %7 = vsyncpa [#allocation5], 0  ;;  %s1449_s0 = inlined_call_operand.vmem [shape: f32[16], index: 0, kind: input, shape index: {}]   ;;  %s1450_s1 = inlined_call_operand.hbm [shape: f32[16,128,128], index: 1, kind: input, shape index: {}]   ;;  %s1451_s2 = inlined_call_operand.vmem [shape: f32[128,128], index: 2, kind: output, shape index: {}]  }
   0x1   :  { %s15_s11 = sshll.u32 %s1449_s0, 4  ;;  %s16_s11 = int_to_ptr.vmem [resolvable:$true] %s15_s11 }
   0x2   :  { %8 = vsyncpa [#allocation4], 0  ;;  %s981_s12 = scalar_lea.vmem %s16_s11, 16  ;;  %p986_p1 = scmp.lt.s32.totalorder %s16_s11, %s16_s11 }
   0x3   :  { %p982_p0 = scmp.ne.s32.totalorder %s16_s11, %s981_s12  ;;  %p987_p2 = scmp.lt.s32.totalorder %s981_s12, %s981_s12 }
   0x5   :  { %p988_p3 = por %p987_p2, %p986_p1 }
   0x7   :  { %p989_p4 = pnand %p988_p3, %p982_p0 }
   0x9   :  { %992 = shalt.err (!%p989_p4)
}
   0xa   :  { %s1019_s13 = smov [#allocation3]   ;;  %s1020_s14 = smov [#allocation6]  }
   0xb   :  { %18 = dma.vmem_to_smem %s16_s11, 16, %s1019_s13, [#allocation5]  }
   0xc   :  { %s24_s15 = sshll.u32 %s1020_s14, 4  ;;  %s993_s18 = scalar_lea.hbm %s1450_s1, 32768  ;;  %s25_s15 = int_to_ptr.vmem [resolvable:$true] %s24_s15 }
   0xd   :  { %p994_p5 = scmp.ne.s32.totalorder %s1450_s1, %s993_s18  ;;  %p997_p6 = scmp.lt.u32.totalorder %s993_s18, %s1450_s1 }
   0xf   :  { %p999_p7 = pnand %p997_p6, %p994_p5 }
  0x11   :  { %1002 = shalt.err (!%p999_p7)
}
  0x12   :  { %s1003_s22 = scalar_lea.vmem %s25_s15, 32768  ;;  %p1008_p9 = scmp.lt.s32.totalorder %s25_s15, %s25_s15 }
  0x13   :  { %p1004_p8 = scmp.ne.s32.totalorder %s25_s15, %s1003_s22  ;;  %p1009_p10 = scmp.lt.s32.totalorder %s1003_s22, %s1003_s22 }
  0x15   :  { %p1010_p11 = por %p1009_p10, %p1008_p9 }
  0x17   :  { %p1011_p12 = pnand %p1010_p11, %p1004_p8 }
  0x19   :  { %1014 = shalt.err (!%p1011_p12)
}
  0x1a   :  { %s1021_s23 = smov 128   ;;  %s1022_s24 = smov 8  }
  0x1b   :  { %30 = dma.hbm_to_vmem [thread:$0]  %s1450_s1, 32768, %s25_s15, [#allocation4], %s1021_s23, %s1021_s23, %s1022_s24  }
  0x1c   :  { %1015 = dma.done.wait [#allocation5], 16  }
  0x1d   :  { %1016 = vsyncadd [#allocation5], 4294967280 }
  0x1e   :  { %1017 = dma.done.wait [#allocation4], 32768  }
  0x1f   :  { %1018 = vsyncadd [#allocation4], 4294934528 }
  0x20   :  { %37 = sfence }
  0x21   :  { %s75_s27 = sld [smem:[#allocation3]]  ;;  %s962_s28 = sld [smem:[#allocation3 + $0x1]]  ;;  %v76_v0 = vld [vmem:[#allocation6] sm:$0xff]  ;;  %v77_v21 = vld [vmem:[#allocation6 + $0x8] sm:$0xff]  ;;  %v78_v50 = vld [vmem:[#allocation6 + $0x10] sm:$0xff] }
  0x22   :  { %s963_s29 = sld [smem:[#allocation3 + $0x2]]  ;;  %s964_s30 = sld [smem:[#allocation3 + $0x3]]  ;;  %v128_v1 = vld [vmem:[#allocation6 + $0x80] sm:$0xff]  ;;  %v129_v22 = vld [vmem:[#allocation6 + $0x88] sm:$0xff]  ;;  %v130_v51 = vld [vmem:[#allocation6 + $0x90] sm:$0xff] }
  0x23   :  { %s965_s3 = sld [smem:[#allocation3 + $0x4]]  ;;  %s966_s4 = sld [smem:[#allocation3 + $0x5]]  ;;  %v180_v2 = vld [vmem:[#allocation6 + $0x100] sm:$0xff]  ;;  %v181_v29 = vld [vmem:[#allocation6 + $0x108] sm:$0xff]  ;;  %v182_v57 = vld [vmem:[#allocation6 + $0x110] sm:$0xff] }
  0x24   :  { %s967_s5 = sld [smem:[#allocation3 + $0x6]]  ;;  %s1053_s6 = sld [smem:[#allocation3 + $0x7]]  ;;  %v232_v5 = vld [vmem:[#allocation6 + $0x180] sm:$0xff]  ;;  %v233_v33 = vld [vmem:[#allocation6 + $0x188] sm:$0xff] }
  0x25   :  { %s1055_s7 = sld [smem:[#allocation3 + $0x8]]  ;;  %s1061_s1 = sld [smem:[#allocation3 + $0x9]]  ;;  %v284_v11 = vld [vmem:[#allocation6 + $0x200] sm:$0xff]  ;;  %v285_v44 = vld [vmem:[#allocation6 + $0x208] sm:$0xff] }
  0x26   :  { %s1069_s8 = sld [smem:[#allocation3 + $0xa]]  ;;  %s1071_s9 = sld [smem:[#allocation3 + $0xb]]  ;;  %v336_v15 = vld [vmem:[#allocation6 + $0x280] sm:$0xff]  ;;  %v337_v56 = vld [vmem:[#allocation6 + $0x288] sm:$0xff] }
  0x27   :  { %v1057_v3 = vstv %s75_s27  ;;  %v1059_v4 = vstv %s962_s28  ;;  %s1077_s10 = sld [smem:[#allocation3 + $0xc]]  ;;  %s1081_s11 = sld [smem:[#allocation3 + $0xd]]  ;;  %v388_v19 = vld [vmem:[#allocation6 + $0x300] sm:$0xff] }
  0x28   :  { %v93_v6 = vmul.f32 %v1057_v3, %v76_v0  ;;  %v145_v7 = vmul.f32 %v1059_v4, %v128_v1  ;;  %v1065_v8 = vstv %s963_s29  ;;  %v1067_v9 = vstv %s964_s30  ;;  %s1086_s12 = sld [smem:[#allocation3 + $0xe]]  ;;  %s1088_s13 = sld [smem:[#allocation3 + $0xf]]  ;;  %v440_v25 = vld [vmem:[#allocation6 + $0x380] sm:$0xff]  ;;  %v234_v0 = vld [vmem:[#allocation6 + $0x190] sm:$0xff] }
  0x29   :  { %v197_v10 = vmul.f32 %v1065_v8, %v180_v2  ;;  %v1074_v12 = vstv %s965_s3  ;;  %v249_v14 = vmul.f32 %v1067_v9, %v232_v5  ;;  %v1079_v16 = vstv %s966_s4  ;;  %v492_v27 = vld [vmem:[#allocation6 + $0x400] sm:$0xff] }
  0x2a   :  { %v161_v13 = vadd.f32 %v145_v7, %v93_v6  ;;  %v301_v18 = vmul.f32 %v1074_v12, %v284_v11  ;;  %v1084_v20 = vstv %s967_s5  ;;  %v353_v24 = vmul.f32 %v1079_v16, %v336_v15  ;;  %v544_v35 = vld [vmem:[#allocation6 + $0x480] sm:$0xff]  ;;  %v389_v6 = vld [vmem:[#allocation6 + $0x308] sm:$0xff] }
  0x2b   :  { %v1092_v26 = vstv %s1053_s6  ;;  %v1095_v28 = vstv %s1055_s7  ;;  %v405_v30 = vmul.f32 %v1084_v20, %v388_v19  ;;  %v1099_v31 = vstv %s1061_s1  ;;  %v596_v36 = vld [vmem:[#allocation6 + $0x500] sm:$0xff]  ;;  %v441_v15 = vld [vmem:[#allocation6 + $0x388] sm:$0xff]  ;;  %v286_v19 = vld [vmem:[#allocation6 + $0x210] sm:$0xff] }
  0x2c   :  { %v213_v17 = vadd.f32 %v197_v10, %v161_v13  ;;  %v94_v32 = vmul.f32 %v1057_v3, %v77_v21  ;;  %v1103_v37 = vstv %s1069_s8  ;;  %v648_v38 = vld [vmem:[#allocation6 + $0x580] sm:$0xff]  ;;  %v1106_v39 = vstv %s1071_s9 }
  0x2d   :  { %v146_v40 = vmul.f32 %v1059_v4, %v129_v22  ;;  %v457_v41 = vmul.f32 %v1092_v26, %v440_v25  ;;  %v509_v42 = vmul.f32 %v1095_v28, %v492_v27  ;;  %v198_v43 = vmul.f32 %v1065_v8, %v181_v29  ;;  %v700_v46 = vld [vmem:[#allocation6 + $0x600] sm:$0xff] }
  0x2e   :  { %v265_v23 = vadd.f32 %v249_v14, %v213_v17  ;;  %v1113_v47 = vstv %s1077_s10  ;;  %v250_v49 = vmul.f32 %v1067_v9, %v233_v33  ;;  %v561_v52 = vmul.f32 %v1099_v31, %v544_v35  ;;  %v752_v59 = vld [vmem:[#allocation6 + $0x680] sm:$0xff]  ;;  %v493_v17 = vld [vmem:[#allocation6 + $0x408] sm:$0xff]  ;;  %v338_v35 = vld [vmem:[#allocation6 + $0x290] sm:$0xff] }
  0x2f   :  { %v162_v48 = vadd.f32 %v146_v40, %v94_v32  ;;  %v613_v53 = vmul.f32 %v1103_v37, %v596_v36  ;;  %v1119_v54 = vmul.f32 %v1106_v39, %v648_v38  ;;  %v1122_v55 = vstv %s1081_s11  ;;  %v804_v60 = vld [vmem:[#allocation6 + $0x700] sm:$0xff]  ;;  %v79_v36 = vld [vmem:[#allocation6 + $0x18] sm:$0xff] }
  0x30   :  { %v317_v34 = vadd.f32 %v301_v18, %v265_v23  ;;  %v1125_v61 = vstv %s1086_s12  ;;  %v302_v63 = vmul.f32 %v1074_v12, %v285_v44  ;;  %v1129_v1 = vmul.f32 %v1113_v47, %v700_v46  ;;  %v856_v2 = vld [vmem:[#allocation6 + $0x780] sm:$0xff]  ;;  %v545_v23 = vld [vmem:[#allocation6 + $0x488] sm:$0xff]  ;;  %v131_v44 = vld [vmem:[#allocation6 + $0x98] sm:$0xff] }
  0x31   :  { %v214_v62 = vadd.f32 %v198_v43, %v162_v48  ;;  %v1132_v5 = vstv %s1088_s13  ;;  %v95_v7 = vmul.f32 %v1057_v3, %v78_v50  ;;  %v147_v10 = vmul.f32 %v1059_v4, %v130_v51  ;;  %v701_v50 = vld [vmem:[#allocation6 + $0x608] sm:$0xff] }
  0x32   :  { %v369_v45 = vadd.f32 %v353_v24, %v317_v34  ;;  %v354_v14 = vmul.f32 %v1079_v16, %v337_v56  ;;  %v199_v18 = vmul.f32 %v1065_v8, %v182_v57  ;;  %v1139_v21 = vmul.f32 %v1122_v55, %v752_v59  ;;  %v597_v24 = vld [vmem:[#allocation6 + $0x508] sm:$0xff]  ;;  %v390_v56 = vld [vmem:[#allocation6 + $0x310] sm:$0xff] }
  0x33   :  { %v266_v13 = vadd.f32 %v250_v49, %v214_v62  ;;  %v1142_v22 = vmul.f32 %v1125_v61, %v804_v60  ;;  %v163_v25 = vadd.f32 %v147_v10, %v95_v7  ;;  %v251_v27 = vmul.f32 %v1067_v9, %v234_v0  ;;  %v649_v34 = vld [vmem:[#allocation6 + $0x588] sm:$0xff]  ;;  %v235_v62 = vld [vmem:[#allocation6 + $0x198] sm:$0xff] }
  0x34   :  { %v421_v58 = vadd.f32 %v405_v30, %v369_v45  ;;  %v1146_v30 = vmul.f32 %v1132_v5, %v856_v2  ;;  %v406_v33 = vmul.f32 %v1084_v20, %v389_v6  ;;  %v458_v38 = vmul.f32 %v1092_v26, %v441_v15  ;;  %v183_v45 = vld [vmem:[#allocation6 + $0x118] sm:$0xff]  ;;  %v753_v51 = vld [vmem:[#allocation6 + $0x688] sm:$0xff]  ;;  %v442_v6 = vld [vmem:[#allocation6 + $0x390] sm:$0xff] }
  0x35   :  { %v318_v32 = vadd.f32 %v302_v63, %v266_v13  ;;  %v510_v40 = vmul.f32 %v1095_v28, %v493_v17  ;;  %v303_v43 = vmul.f32 %v1074_v12, %v286_v19  ;;  %v562_v48 = vmul.f32 %v1099_v31, %v545_v23  ;;  %v857_v2 = vld [vmem:[#allocation6 + $0x788] sm:$0xff]  ;;  %v287_v17 = vld [vmem:[#allocation6 + $0x218] sm:$0xff]  ;;  %v494_v19 = vld [vmem:[#allocation6 + $0x410] sm:$0xff] }
  0x36   :  { %v473_v11 = vadd.f32 %v457_v41, %v421_v58  ;;  %v215_v41 = vadd.f32 %v199_v18, %v163_v25  ;;  %v614_v49 = vmul.f32 %v1103_v37, %v597_v24  ;;  %v1155_v57 = vmul.f32 %v1106_v39, %v649_v34  ;;  %v546_v23 = vld [vmem:[#allocation6 + $0x490] sm:$0xff] }
  0x37   :  { %v355_v59 = vmul.f32 %v1079_v16, %v338_v35  ;;  %v96_v60 = vmul.f32 %v1057_v3, %v79_v36  ;;  %v148_v7 = vmul.f32 %v1059_v4, %v131_v44  ;;  %v200_v10 = vmul.f32 %v1065_v8, %v183_v45  ;;  %v598_v24 = vld [vmem:[#allocation6 + $0x510] sm:$0xff]  ;;  %v339_v35 = vld [vmem:[#allocation6 + $0x298] sm:$0xff]  ;;  %v80_v44 = vld [vmem:[#allocation6 + $0x20] sm:$0xff] }
  0x38   :  { %v525_v29 = vadd.f32 %v509_v42, %v473_v11  ;;  %v370_v42 = vadd.f32 %v354_v14, %v318_v32  ;;  %v267_v58 = vadd.f32 %v251_v27, %v215_v41  ;;  %v1162_v11 = vmul.f32 %v1113_v47, %v701_v50  ;;  %v132_v45 = vld [vmem:[#allocation6 + $0xa0] sm:$0xff] }
  0x39   :  { %v1165_v13 = vmul.f32 %v1122_v55, %v753_v51  ;;  %v407_v15 = vmul.f32 %v1084_v20, %v390_v56  ;;  %v164_v25 = vadd.f32 %v148_v7, %v96_v60  ;;  %v252_v27 = vmul.f32 %v1067_v9, %v235_v62  ;;  %v184_v56 = vld [vmem:[#allocation6 + $0x120] sm:$0xff]  ;;  %v650_v60 = vld [vmem:[#allocation6 + $0x590] sm:$0xff] }
  0x3a   :  { %v577_v46 = vadd.f32 %v561_v52, %v525_v29  ;;  %v422_v0 = vadd.f32 %v406_v33, %v370_v42  ;;  %v805_v52 = vld [vmem:[#allocation6 + $0x708] sm:$0xff]  ;;  %v319_v14 = vadd.f32 %v303_v43, %v267_v58  ;;  %v1174_v32 = vmul.f32 %v1132_v5, %v857_v2  ;;  %v391_v43 = vld [vmem:[#allocation6 + $0x318] sm:$0xff]  ;;  %v236_v62 = vld [vmem:[#allocation6 + $0x1a0] sm:$0xff] }
  0x3b   :  { %v1171_v29 = vmul.f32 %v1125_v61, %v805_v52  ;;  %v459_v34 = vmul.f32 %v1092_v26, %v442_v6  ;;  %v304_v41 = vmul.f32 %v1074_v12, %v287_v17  ;;  %v511_v42 = vmul.f32 %v1095_v28, %v494_v19  ;;  %v443_v52 = vld [vmem:[#allocation6 + $0x398] sm:$0xff] }
  0x3c   :  { %v629_v63 = vadd.f32 %v613_v53, %v577_v46  ;;  %v474_v18 = vadd.f32 %v458_v38, %v422_v0  ;;  %v371_v33 = vadd.f32 %v355_v59, %v319_v14  ;;  %v216_v38 = vadd.f32 %v200_v10, %v164_v25  ;;  %v702_v14 = vld [vmem:[#allocation6 + $0x610] sm:$0xff]  ;;  %v495_v19 = vld [vmem:[#allocation6 + $0x418] sm:$0xff] }
  0x3d   :  { %v563_v50 = vmul.f32 %v1099_v31, %v546_v23  ;;  %v615_v51 = vmul.f32 %v1103_v37, %v598_v24  ;;  %v408_v0 = vmul.f32 %v1084_v20, %v391_v43  ;;  %v97_v2 = vmul.f32 %v1057_v3, %v80_v44 }
  0x3e   :  { %v681_v53 = vadd.f32 %v1119_v54, %v629_v63  ;;  %v526_v54 = vadd.f32 %v510_v40, %v474_v18  ;;  %v423_v46 = vadd.f32 %v407_v15, %v371_v33  ;;  %v356_v40 = vmul.f32 %v1079_v16, %v339_v35  ;;  %v754_v18 = vld [vmem:[#allocation6 + $0x690] sm:$0xff] }
  0x3f   :  { %v149_v6 = vmul.f32 %v1059_v4, %v132_v45  ;;  %v253_v24 = vmul.f32 %v1067_v9, %v236_v62  ;;  %v806_v33 = vld [vmem:[#allocation6 + $0x710] sm:$0xff]  ;;  %v512_v45 = vmul.f32 %v1095_v28, %v495_v19  ;;  %v703_v19 = vld [vmem:[#allocation6 + $0x618] sm:$0xff] }
  0x40   :  { %v733_v36 = vadd.f32 %v1129_v1, %v681_v53  ;;  %v578_v59 = vadd.f32 %v562_v48, %v526_v54  ;;  %v268_v1 = vadd.f32 %v252_v27, %v216_v38  ;;  %v475_v63 = vadd.f32 %v459_v34, %v423_v46  ;;  %v288_v48 = vld [vmem:[#allocation6 + $0x220] sm:$0xff]  ;;  %v547_v54 = vld [vmem:[#allocation6 + $0x498] sm:$0xff] }
  0x41   :  { %v667_v53 = vmul.f32 %v1106_v39, %v650_v60  ;;  %v165_v23 = vadd.f32 %v149_v6, %v97_v2  ;;  %v340_v34 = vld [vmem:[#allocation6 + $0x2a0] sm:$0xff]  ;;  %v599_v38 = vld [vmem:[#allocation6 + $0x518] sm:$0xff]  ;;  %v305_v43 = vmul.f32 %v1074_v12, %v288_v48  ;;  %v81_v60 = vld [vmem:[#allocation6 + $0x28] sm:$0xff] }
  0x42   :  { %v785_v58 = vadd.f32 %v1139_v21, %v733_v36  ;;  %v630_v10 = vadd.f32 %v614_v49, %v578_v59  ;;  %v320_v15 = vadd.f32 %v304_v41, %v268_v1  ;;  %v201_v21 = vmul.f32 %v1065_v8, %v184_v56  ;;  %v651_v46 = vld [vmem:[#allocation6 + $0x598] sm:$0xff]  ;;  %v133_v1 = vld [vmem:[#allocation6 + $0xa8] sm:$0xff]  ;;  %v496_v48 = vld [vmem:[#allocation6 + $0x420] sm:$0xff] }
  0x43   :  { %v527_v17 = vadd.f32 %v511_v42, %v475_v63  ;;  %v460_v49 = vmul.f32 %v1092_v26, %v443_v52  ;;  %v719_v36 = vmul.f32 %v1113_v47, %v702_v14  ;;  %v392_v42 = vld [vmem:[#allocation6 + $0x320] sm:$0xff]  ;;  %v823_v56 = vmul.f32 %v1125_v61, %v806_v33  ;;  %v185_v52 = vld [vmem:[#allocation6 + $0x128] sm:$0xff] }
  0x44   :  { %v837_v7 = vadd.f32 %v1142_v22, %v785_v58  ;;  %v682_v27 = vadd.f32 %v1155_v57, %v630_v10  ;;  %v372_v22 = vadd.f32 %v356_v40, %v320_v15  ;;  %v217_v41 = vadd.f32 %v201_v21, %v165_v23  ;;  %v237_v10 = vld [vmem:[#allocation6 + $0x1a8] sm:$0xff]  ;;  %v858_v15 = vld [vmem:[#allocation6 + $0x790] sm:$0xff] }
  0x45   :  { %v579_v35 = vadd.f32 %v563_v50, %v527_v17  ;;  %v771_v57 = vmul.f32 %v1122_v55, %v754_v18  ;;  %v357_v59 = vmul.f32 %v1079_v16, %v340_v34  ;;  %v616_v63 = vmul.f32 %v1103_v37, %v599_v38  ;;  %v807_v38 = vld [vmem:[#allocation6 + $0x718] sm:$0xff] }
  0x46   :  { %v889_v25 = vadd.f32 %v1146_v30, %v837_v7  ;;  %v734_v30 = vadd.f32 %v1162_v11, %v682_v27  ;;  %v424_v44 = vadd.f32 %v408_v0, %v372_v22  ;;  %v269_v58 = vadd.f32 %v253_v24, %v217_v41  ;;  %v444_v0 = vld [vmem:[#allocation6 + $0x3a0] sm:$0xff]  ;;  %v755_v22 = vld [vmem:[#allocation6 + $0x698] sm:$0xff] }
  0x47   :  { %v631_v50 = vadd.f32 %v615_v51, %v579_v35  ;;  %v564_v11 = vmul.f32 %v1099_v31, %v547_v54  ;;  %v668_v6 = vmul.f32 %v1106_v39, %v651_v46  ;;  %v409_v7 = vmul.f32 %v1084_v20, %v392_v42 }
  0x48   :  { %940 = vst [vmem:[%s1451_s2] sm:$0xff] %v889_v25  ;;  %v786_v40 = vadd.f32 %v1165_v13, %v734_v30  ;;  %v476_v62 = vadd.f32 %v460_v49, %v424_v44  ;;  %v321_v51 = vadd.f32 %v305_v43, %v269_v58  ;;  %v98_v13 = vmul.f32 %v1057_v3, %v81_v60  ;;  %v289_v25 = vld [vmem:[#allocation6 + $0x228] sm:$0xff]  ;;  %v859_v44 = vld [vmem:[#allocation6 + $0x798] sm:$0xff] }
  0x49   :  { %v683_v2 = vadd.f32 %v667_v53, %v631_v50  ;;  %v150_v17 = vmul.f32 %v1059_v4, %v133_v1  ;;  %v461_v53 = vmul.f32 %v1092_v26, %v444_v0  ;;  %v202_v24 = vmul.f32 %v1065_v8, %v185_v52  ;;  %v341_v43 = vld [vmem:[#allocation6 + $0x2a8] sm:$0xff]  ;;  %v82_v1 = vld [vmem:[#allocation6 + $0x30] sm:$0xff] }
  0x4a   :  { %v838_v14 = vadd.f32 %v1171_v29, %v786_v40  ;;  %v528_v21 = vadd.f32 %v512_v45, %v476_v62  ;;  %v373_v23 = vadd.f32 %v357_v59, %v321_v51  ;;  %v548_v29 = vld [vmem:[#allocation6 + $0x4a0] sm:$0xff]  ;;  %v254_v34 = vmul.f32 %v1067_v9, %v237_v10  ;;  %v393_v60 = vld [vmem:[#allocation6 + $0x328] sm:$0xff]  ;;  %v134_v52 = vld [vmem:[#allocation6 + $0xb0] sm:$0xff] }
  0x4b   :  { %v735_v18 = vadd.f32 %v719_v36, %v683_v2  ;;  %v166_v49 = vadd.f32 %v150_v17, %v98_v13  ;;  %v875_v54 = vmul.f32 %v1132_v5, %v858_v15  ;;  %v513_v41 = vmul.f32 %v1095_v28, %v496_v48  ;;  %v600_v45 = vld [vmem:[#allocation6 + $0x520] sm:$0xff]  ;;  %v186_v2 = vld [vmem:[#allocation6 + $0x130] sm:$0xff]  ;;  %v445_v15 = vld [vmem:[#allocation6 + $0x3a8] sm:$0xff] }
  0x4c   :  { %v890_v27 = vadd.f32 %v1174_v32, %v838_v14  ;;  %v580_v33 = vadd.f32 %v564_v11, %v528_v21  ;;  %v425_v36 = vadd.f32 %v409_v7, %v373_v23  ;;  %v720_v32 = vmul.f32 %v1113_v47, %v703_v19  ;;  %v652_v11 = vld [vmem:[#allocation6 + $0x5a0] sm:$0xff] }
  0x4d   :  { %v787_v35 = vadd.f32 %v771_v57, %v735_v18  ;;  %v218_v46 = vadd.f32 %v202_v24, %v166_v49  ;;  %v306_v42 = vmul.f32 %v1074_v12, %v289_v25  ;;  %v772_v50 = vmul.f32 %v1122_v55, %v755_v22  ;;  %v704_v14 = vld [vmem:[#allocation6 + $0x620] sm:$0xff]  ;;  %v238_v18 = vld [vmem:[#allocation6 + $0x1b0] sm:$0xff]  ;;  %v497_v24 = vld [vmem:[#allocation6 + $0x428] sm:$0xff] }
  0x4e   :  { %941 = vst [vmem:[%s1451_s2 + $0x8] sm:$0xff] %v890_v27  ;;  %v632_v30 = vadd.f32 %v616_v63, %v580_v33  ;;  %v477_v58 = vadd.f32 %v461_v53, %v425_v36  ;;  %v565_v59 = vmul.f32 %v1099_v31, %v548_v29  ;;  %v824_v62 = vmul.f32 %v1125_v61, %v807_v38  ;;  %v756_v48 = vld [vmem:[#allocation6 + $0x6a0] sm:$0xff]  ;;  %v549_v36 = vld [vmem:[#allocation6 + $0x4a8] sm:$0xff] }
  0x4f   :  { %v839_v57 = vadd.f32 %v823_v56, %v787_v35  ;;  %v270_v63 = vadd.f32 %v254_v34, %v218_v46  ;;  %v358_v0 = vmul.f32 %v1079_v16, %v341_v43  ;;  %v876_v7 = vmul.f32 %v1132_v5, %v859_v44  ;;  %v808_v53 = vld [vmem:[#allocation6 + $0x720] sm:$0xff]  ;;  %v290_v35 = vld [vmem:[#allocation6 + $0x230] sm:$0xff] }
  0x50   :  { %v684_v40 = vadd.f32 %v668_v6, %v632_v30  ;;  %v529_v56 = vadd.f32 %v513_v41, %v477_v58  ;;  %v617_v10 = vmul.f32 %v1103_v37, %v600_v45  ;;  %v410_v6 = vmul.f32 %v1084_v20, %v393_v60  ;;  %v860_v29 = vld [vmem:[#allocation6 + $0x7a0] sm:$0xff]  ;;  %v601_v41 = vld [vmem:[#allocation6 + $0x528] sm:$0xff] }
  0x51   :  { %v891_v51 = vadd.f32 %v875_v54, %v839_v57  ;;  %v322_v13 = vadd.f32 %v306_v42, %v270_v63  ;;  %v99_v17 = vmul.f32 %v1057_v3, %v82_v1  ;;  %v669_v23 = vmul.f32 %v1106_v39, %v652_v11  ;;  %v653_v42 = vld [vmem:[#allocation6 + $0x5a8] sm:$0xff]  ;;  %v342_v57 = vld [vmem:[#allocation6 + $0x2b0] sm:$0xff]  ;;  %v83_v1 = vld [vmem:[#allocation6 + $0x38] sm:$0xff] }
  0x52   :  { %v736_v21 = vadd.f32 %v720_v32, %v684_v40  ;;  %v581_v19 = vadd.f32 %v565_v59, %v529_v56  ;;  %v151_v25 = vmul.f32 %v1059_v4, %v134_v52  ;;  %v203_v27 = vmul.f32 %v1065_v8, %v186_v2  ;;  %v135_v40 = vld [vmem:[#allocation6 + $0xb8] sm:$0xff]  ;;  %v705_v2 = vld [vmem:[#allocation6 + $0x628] sm:$0xff] }
  0x53   :  { %942 = vst [vmem:[%s1451_s2 + $0x10] sm:$0xff] %v891_v51  ;;  %v721_v22 = vmul.f32 %v1113_v47, %v704_v14  ;;  %v374_v49 = vadd.f32 %v358_v0, %v322_v13  ;;  %v462_v34 = vmul.f32 %v1092_v26, %v445_v15  ;;  %v773_v38 = vmul.f32 %v1122_v55, %v756_v48  ;;  %v187_v11 = vld [vmem:[#allocation6 + $0x138] sm:$0xff]  ;;  %v394_v51 = vld [vmem:[#allocation6 + $0x330] sm:$0xff]  ;;  %v757_v14 = vld [vmem:[#allocation6 + $0x6a8] sm:$0xff] }
  0x54   :  { %v788_v33 = vadd.f32 %v772_v50, %v736_v21  ;;  %v633_v54 = vadd.f32 %v617_v10, %v581_v19  ;;  %v167_v43 = vadd.f32 %v151_v25, %v99_v17  ;;  %v255_v30 = vmul.f32 %v1067_v9, %v238_v18  ;;  %v239_v48 = vld [vmem:[#allocation6 + $0x1b8] sm:$0xff]  ;;  %v809_v13 = vld [vmem:[#allocation6 + $0x728] sm:$0xff] }
  0x55   :  { %v825_v44 = vmul.f32 %v1125_v61, %v808_v53  ;;  %v426_v45 = vadd.f32 %v410_v6, %v374_v49  ;;  %v514_v46 = vmul.f32 %v1095_v28, %v497_v24  ;;  %v877_v58 = vmul.f32 %v1132_v5, %v860_v29  ;;  %v446_v6 = vld [vmem:[#allocation6 + $0x3b0] sm:$0xff]  ;;  %v861_v24 = vld [vmem:[#allocation6 + $0x7a8] sm:$0xff] }
  0x56   :  { %v840_v32 = vadd.f32 %v824_v62, %v788_v33  ;;  %v685_v50 = vadd.f32 %v669_v23, %v633_v54  ;;  %v219_v59 = vadd.f32 %v203_v27, %v167_v43  ;;  %v307_v60 = vmul.f32 %v1074_v12, %v290_v35  ;;  %v291_v33 = vld [vmem:[#allocation6 + $0x238] sm:$0xff]  ;;  %v498_v49 = vld [vmem:[#allocation6 + $0x430] sm:$0xff] }
  0x57   :  { %v478_v0 = vadd.f32 %v462_v34, %v426_v45  ;;  %v566_v62 = vmul.f32 %v1099_v31, %v549_v36  ;;  %v618_v52 = vmul.f32 %v1103_v37, %v601_v41  ;;  %v670_v10 = vmul.f32 %v1106_v39, %v653_v42  ;;  %v550_v34 = vld [vmem:[#allocation6 + $0x4b0] sm:$0xff] }
  0x58   :  { %v892_v63 = vadd.f32 %v876_v7, %v840_v32  ;;  %v737_v56 = vadd.f32 %v721_v22, %v685_v50  ;;  %v271_v15 = vadd.f32 %v255_v30, %v219_v59  ;;  %v359_v21 = vmul.f32 %v1079_v16, %v342_v57  ;;  %v602_v30 = vld [vmem:[#allocation6 + $0x530] sm:$0xff]  ;;  %v343_v32 = vld [vmem:[#allocation6 + $0x2b8] sm:$0xff]  ;;  %v84_v59 = vld [vmem:[#allocation6 + $0x40] sm:$0xff] }
  0x59   :  { %v530_v7 = vadd.f32 %v514_v46, %v478_v0  ;;  %v100_v17 = vmul.f32 %v1057_v3, %v83_v1  ;;  %v152_v18 = vmul.f32 %v1059_v4, %v135_v40  ;;  %v204_v19 = vmul.f32 %v1065_v8, %v187_v11  ;;  %v654_v42 = vld [vmem:[#allocation6 + $0x5b0] sm:$0xff]  ;;  %v188_v0 = vld [vmem:[#allocation6 + $0x140] sm:$0xff] }
  0x5a   :  { %943 = vst [vmem:[%s1451_s2 + $0x18] sm:$0xff] %v892_v63  ;;  %v789_v23 = vadd.f32 %v773_v38, %v737_v56  ;;  %v722_v53 = vmul.f32 %v1113_v47, %v705_v2  ;;  %v323_v25 = vadd.f32 %v307_v60, %v271_v15  ;;  %v411_v27 = vmul.f32 %v1084_v20, %v394_v51  ;;  %v136_v60 = vld [vmem:[#allocation6 + $0xc0] sm:$0xff]  ;;  %v395_v63 = vld [vmem:[#allocation6 + $0x338] sm:$0xff] }
  0x5b   :  { %v582_v22 = vadd.f32 %v566_v62, %v530_v7  ;;  %v774_v29 = vmul.f32 %v1122_v55, %v757_v14  ;;  %v168_v35 = vadd.f32 %v152_v18, %v100_v17  ;;  %v256_v54 = vmul.f32 %v1067_v9, %v239_v48  ;;  %v240_v14 = vld [vmem:[#allocation6 + $0x1c0] sm:$0xff]  ;;  %v447_v48 = vld [vmem:[#allocation6 + $0x3b8] sm:$0xff] }
  0x5c   :  { %v841_v36 = vadd.f32 %v825_v44, %v789_v23  ;;  %v826_v41 = vmul.f32 %v1125_v61, %v809_v13  ;;  %v375_v43 = vadd.f32 %v359_v21, %v323_v25  ;;  %v463_v38 = vmul.f32 %v1092_v26, %v446_v6  ;;  %v758_v21 = vld [vmem:[#allocation6 + $0x6b0] sm:$0xff]  ;;  %v292_v23 = vld [vmem:[#allocation6 + $0x240] sm:$0xff] }
  0x5d   :  { %v634_v45 = vadd.f32 %v618_v52, %v582_v22  ;;  %v878_v46 = vmul.f32 %v1132_v5, %v861_v24  ;;  %v220_v57 = vadd.f32 %v204_v19, %v168_v35  ;;  %v308_v50 = vmul.f32 %v1074_v12, %v291_v33  ;;  %v706_v52 = vld [vmem:[#allocation6 + $0x630] sm:$0xff]  ;;  %v499_v33 = vld [vmem:[#allocation6 + $0x438] sm:$0xff] }
  0x5e   :  { %v893_v1 = vadd.f32 %v877_v58, %v841_v36  ;;  %v427_v40 = vadd.f32 %v411_v27, %v375_v43  ;;  %v515_v44 = vmul.f32 %v1095_v28, %v498_v49  ;;  %v567_v11 = vmul.f32 %v1099_v31, %v550_v34  ;;  %v810_v6 = vld [vmem:[#allocation6 + $0x730] sm:$0xff]  ;;  %v551_v36 = vld [vmem:[#allocation6 + $0x4b8] sm:$0xff]  ;;  %v344_v43 = vld [vmem:[#allocation6 + $0x2c0] sm:$0xff] }
  0x5f   :  { %v686_v62 = vadd.f32 %v670_v10, %v634_v45  ;;  %v619_v2 = vmul.f32 %v1103_v37, %v602_v30  ;;  %v272_v51 = vadd.f32 %v256_v54, %v220_v57  ;;  %v360_v56 = vmul.f32 %v1079_v16, %v343_v32  ;;  %v862_v27 = vld [vmem:[#allocation6 + $0x7b0] sm:$0xff]  ;;  %v603_v32 = vld [vmem:[#allocation6 + $0x538] sm:$0xff]  ;;  %v396_v57 = vld [vmem:[#allocation6 + $0x340] sm:$0xff] }
  0x60   :  { %944 = vst [vmem:[%s1451_s2 + $0x20] sm:$0xff] %v893_v1  ;;  %v479_v58 = vadd.f32 %v463_v38, %v427_v40  ;;  %v671_v15 = vmul.f32 %v1106_v39, %v654_v42  ;;  %v101_v7 = vmul.f32 %v1057_v3, %v84_v59  ;;  %v153_v10 = vmul.f32 %v1059_v4, %v136_v60  ;;  %v85_v1 = vld [vmem:[#allocation6 + $0x48] sm:$0xff] }
  0x61   :  { %v738_v13 = vadd.f32 %v722_v53, %v686_v62  ;;  %v324_v17 = vadd.f32 %v308_v50, %v272_v51  ;;  %v412_v18 = vmul.f32 %v1084_v20, %v395_v63  ;;  %v205_v19 = vmul.f32 %v1065_v8, %v188_v0  ;;  %v137_v40 = vld [vmem:[#allocation6 + $0xc8] sm:$0xff] }
  0x62   :  { %v531_v24 = vadd.f32 %v515_v44, %v479_v58  ;;  %v723_v25 = vmul.f32 %v1113_v47, %v706_v52  ;;  %v169_v22 = vadd.f32 %v153_v10, %v101_v7  ;;  %v257_v49 = vmul.f32 %v1067_v9, %v240_v14  ;;  %v448_v52 = vld [vmem:[#allocation6 + $0x3c0] sm:$0xff]  ;;  %v189_v51 = vld [vmem:[#allocation6 + $0x148] sm:$0xff]  ;;  %v707_v7 = vld [vmem:[#allocation6 + $0x638] sm:$0xff] }
  0x63   :  { %v790_v34 = vadd.f32 %v774_v29, %v738_v13  ;;  %v775_v35 = vmul.f32 %v1122_v55, %v758_v21  ;;  %v376_v54 = vadd.f32 %v360_v56, %v324_v17  ;;  %v464_v53 = vmul.f32 %v1092_v26, %v447_v48  ;;  %v241_v21 = vld [vmem:[#allocation6 + $0x1c8] sm:$0xff]  ;;  %v759_v10 = vld [vmem:[#allocation6 + $0x6b8] sm:$0xff] }
  0x64   :  { %v583_v38 = vadd.f32 %v567_v11, %v531_v24  ;;  %v827_v30 = vmul.f32 %v1125_v61, %v810_v6  ;;  %v221_v45 = vadd.f32 %v205_v19, %v169_v22  ;;  %v309_v42 = vmul.f32 %v1074_v12, %v292_v23  ;;  %v655_v11 = vld [vmem:[#allocation6 + $0x5b8] sm:$0xff] }
  0x65   :  { %v842_v50 = vadd.f32 %v826_v41, %v790_v34  ;;  %v1282_v59 = vmul.f32 %v1132_v5, %v862_v27  ;;  %v428_v29 = vadd.f32 %v412_v18, %v376_v54  ;;  %v516_v60 = vmul.f32 %v1095_v28, %v499_v33  ;;  %v811_v27 = vld [vmem:[#allocation6 + $0x738] sm:$0xff] }
  0x66   :  { %v635_v44 = vadd.f32 %v619_v2, %v583_v38  ;;  %v568_v63 = vmul.f32 %v1099_v31, %v551_v36  ;;  %v273_v0 = vadd.f32 %v257_v49, %v221_v45  ;;  %v361_v62 = vmul.f32 %v1079_v16, %v344_v43  ;;  %v500_v2 = vld [vmem:[#allocation6 + $0x440] sm:$0xff]  ;;  %v863_v33 = vld [vmem:[#allocation6 + $0x7b8] sm:$0xff] }
  0x67   :  { %v894_v56 = vadd.f32 %v878_v46, %v842_v50  ;;  %v480_v14 = vadd.f32 %v464_v53, %v428_v29  ;;  %v620_v41 = vmul.f32 %v1103_v37, %v603_v32  ;;  %v413_v58 = vmul.f32 %v1084_v20, %v396_v57  ;;  %v552_v49 = vld [vmem:[#allocation6 + $0x4c0] sm:$0xff]  ;;  %v345_v32 = vld [vmem:[#allocation6 + $0x2c8] sm:$0xff] }
  0x68   :  { %v687_v48 = vadd.f32 %v671_v15, %v635_v44  ;;  %v325_v13 = vadd.f32 %v309_v42, %v273_v0  ;;  %v102_v6 = vmul.f32 %v1057_v3, %v85_v1  ;;  %v154_v17 = vmul.f32 %v1059_v4, %v137_v40  ;;  %v293_v15 = vld [vmem:[#allocation6 + $0x248] sm:$0xff]  ;;  %v604_v57 = vld [vmem:[#allocation6 + $0x540] sm:$0xff] }
  0x69   :  { %945 = vst [vmem:[%s1451_s2 + $0x28] sm:$0xff] %v894_v56  ;;  %v532_v46 = vadd.f32 %v516_v60, %v480_v14  ;;  %v672_v18 = vmul.f32 %v1106_v39, %v655_v11  ;;  %v465_v19 = vmul.f32 %v1092_v26, %v448_v52  ;;  %v206_v23 = vmul.f32 %v1065_v8, %v189_v51  ;;  %v397_v29 = vld [vmem:[#allocation6 + $0x348] sm:$0xff]  ;;  %v86_v60 = vld [vmem:[#allocation6 + $0x50] sm:$0xff]  ;;  %v656_v52 = vld [vmem:[#allocation6 + $0x5c0] sm:$0xff] }
  0x6a   :  { %v739_v24 = vadd.f32 %v723_v25, %v687_v48  ;;  %v377_v22 = vadd.f32 %v361_v62, %v325_v13  ;;  %v170_v34 = vadd.f32 %v154_v17, %v102_v6  ;;  %v258_v54 = vmul.f32 %v1067_v9, %v241_v21  ;;  %v138_v11 = vld [vmem:[#allocation6 + $0xd0] sm:$0xff]  ;;  %v449_v56 = vld [vmem:[#allocation6 + $0x3c8] sm:$0xff] }
  0x6b   :  { %v584_v53 = vadd.f32 %v568_v63, %v532_v46  ;;  %v724_v36 = vmul.f32 %v1113_v47, %v707_v7  ;;  %v776_v43 = vmul.f32 %v1122_v55, %v759_v10  ;;  %v517_v38 = vmul.f32 %v1095_v28, %v500_v2  ;;  %v190_v14 = vld [vmem:[#allocation6 + $0x150] sm:$0xff]  ;;  %v708_v2 = vld [vmem:[#allocation6 + $0x640] sm:$0xff]  ;;  %v501_v17 = vld [vmem:[#allocation6 + $0x448] sm:$0xff] }
  0x6c   :  { %v791_v45 = vadd.f32 %v775_v35, %v739_v24  ;;  %v429_v42 = vadd.f32 %v413_v58, %v377_v22  ;;  %v222_v50 = vadd.f32 %v206_v23, %v170_v34  ;;  %v310_v25 = vmul.f32 %v1074_v12, %v293_v15  ;;  %v242_v7 = vld [vmem:[#allocation6 + $0x1d0] sm:$0xff] }
  0x6d   :  { %v636_v1 = vadd.f32 %v620_v41, %v584_v53  ;;  %v828_v40 = vmul.f32 %v1125_v61, %v811_v27  ;;  %v880_v44 = vmul.f32 %v1132_v5, %v863_v33  ;;  %v569_v63 = vmul.f32 %v1099_v31, %v552_v49  ;;  %v294_v24 = vld [vmem:[#allocation6 + $0x250] sm:$0xff]  ;;  %v812_v27 = vld [vmem:[#allocation6 + $0x740] sm:$0xff]  ;;  %v553_v49 = vld [vmem:[#allocation6 + $0x4c8] sm:$0xff] }
  0x6e   :  { %v843_v0 = vadd.f32 %v827_v30, %v791_v45  ;;  %v481_v62 = vadd.f32 %v465_v19, %v429_v42  ;;  %v274_v51 = vadd.f32 %v258_v54, %v222_v50  ;;  %v362_v35 = vmul.f32 %v1079_v16, %v345_v32  ;;  %v760_v30 = vld [vmem:[#allocation6 + $0x6c0] sm:$0xff]  ;;  %v346_v45 = vld [vmem:[#allocation6 + $0x2d0] sm:$0xff]  ;;  %v605_v50 = vld [vmem:[#allocation6 + $0x548] sm:$0xff] }
  0x6f   :  { %v688_v58 = vadd.f32 %v672_v18, %v636_v1  ;;  %v621_v21 = vmul.f32 %v1103_v37, %v604_v57  ;;  %v414_v41 = vmul.f32 %v1084_v20, %v397_v29  ;;  %v103_v48 = vmul.f32 %v1057_v3, %v86_v60  ;;  %v864_v33 = vld [vmem:[#allocation6 + $0x7c0] sm:$0xff]  ;;  %v398_v60 = vld [vmem:[#allocation6 + $0x350] sm:$0xff]  ;;  %v87_v1 = vld [vmem:[#allocation6 + $0x58] sm:$0xff] }
  0x70   :  { %v895_v10 = vadd.f32 %v1282_v59, %v843_v0  ;;  %v533_v13 = vadd.f32 %v517_v38, %v481_v62  ;;  %v326_v6 = vadd.f32 %v310_v25, %v274_v51  ;;  %v155_v46 = vmul.f32 %v1059_v4, %v138_v11  ;;  %v657_v62 = vld [vmem:[#allocation6 + $0x5c8] sm:$0xff] }
  0x71   :  { %v740_v19 = vadd.f32 %v724_v36, %v688_v58  ;;  %v673_v23 = vmul.f32 %v1106_v39, %v656_v52  ;;  %v466_v18 = vmul.f32 %v1092_v26, %v449_v56  ;;  %v207_v15 = vmul.f32 %v1065_v8, %v190_v14  ;;  %v139_v52 = vld [vmem:[#allocation6 + $0xd8] sm:$0xff]  ;;  %v450_v58 = vld [vmem:[#allocation6 + $0x3d0] sm:$0xff] }
  0x72   :  { %946 = vst [vmem:[%s1451_s2 + $0x30] sm:$0xff] %v895_v10  ;;  %v585_v59 = vadd.f32 %v569_v63, %v533_v13  ;;  %v378_v22 = vadd.f32 %v362_v35, %v326_v6  ;;  %v171_v34 = vadd.f32 %v155_v46, %v103_v48  ;;  %v259_v54 = vmul.f32 %v1067_v9, %v242_v7  ;;  %v761_v6 = vld [vmem:[#allocation6 + $0x6c8] sm:$0xff]  ;;  %v502_v46 = vld [vmem:[#allocation6 + $0x450] sm:$0xff] }
  0x73   :  { %v792_v53 = vadd.f32 %v776_v43, %v740_v19  ;;  %v725_v36 = vmul.f32 %v1113_v47, %v708_v2  ;;  %v777_v38 = vmul.f32 %v1122_v55, %v760_v30  ;;  %v518_v32 = vmul.f32 %v1095_v28, %v501_v17 }
  0x74   :  { %v637_v42 = vadd.f32 %v621_v21, %v585_v59  ;;  %v430_v57 = vadd.f32 %v414_v41, %v378_v22  ;;  %v223_v25 = vadd.f32 %v207_v15, %v171_v34  ;;  %v311_v29 = vmul.f32 %v1074_v12, %v294_v24  ;;  %v191_v21 = vld [vmem:[#allocation6 + $0x158] sm:$0xff]  ;;  %v865_v22 = vld [vmem:[#allocation6 + $0x7c8] sm:$0xff]  ;;  %v554_v34 = vld [vmem:[#allocation6 + $0x4d0] sm:$0xff] }
  0x75   :  { %v844_v63 = vadd.f32 %v828_v40, %v792_v53  ;;  %v829_v11 = vmul.f32 %v1125_v61, %v812_v27  ;;  %v881_v43 = vmul.f32 %v1132_v5, %v864_v33  ;;  %v570_v0 = vmul.f32 %v1099_v31, %v553_v49  ;;  %v243_v41 = vld [vmem:[#allocation6 + $0x1d8] sm:$0xff]  ;;  %v709_v40 = vld [vmem:[#allocation6 + $0x648] sm:$0xff] }
  0x76   :  { %v689_v51 = vadd.f32 %v673_v23, %v637_v42  ;;  %v482_v35 = vadd.f32 %v466_v18, %v430_v57  ;;  %v275_v56 = vadd.f32 %v259_v54, %v223_v25  ;;  %v363_v14 = vmul.f32 %v1079_v16, %v346_v45  ;;  %v295_v23 = vld [vmem:[#allocation6 + $0x258] sm:$0xff]  ;;  %v813_v18 = vld [vmem:[#allocation6 + $0x748] sm:$0xff]  ;;  %v606_v42 = vld [vmem:[#allocation6 + $0x550] sm:$0xff] }
  0x77   :  { %v896_v48 = vadd.f32 %v880_v44, %v844_v63  ;;  %v622_v7 = vmul.f32 %v1103_v37, %v605_v50  ;;  %v415_v10 = vmul.f32 %v1084_v20, %v398_v60  ;;  %v104_v13 = vmul.f32 %v1057_v3, %v87_v1  ;;  %v347_v53 = vld [vmem:[#allocation6 + $0x2d8] sm:$0xff]  ;;  %v88_v1 = vld [vmem:[#allocation6 + $0x60] sm:$0xff] }
  0x78   :  { %v741_v2 = vadd.f32 %v725_v36, %v689_v51  ;;  %v534_v30 = vadd.f32 %v518_v32, %v482_v35  ;;  %v327_v17 = vadd.f32 %v311_v29, %v275_v56  ;;  %v156_v19 = vmul.f32 %v1059_v4, %v139_v52  ;;  %v140_v63 = vld [vmem:[#allocation6 + $0xe0] sm:$0xff] }
  0x79   :  { %947 = vst [vmem:[%s1451_s2 + $0x38] sm:$0xff] %v896_v48  ;;  %v674_v44 = vmul.f32 %v1106_v39, %v657_v62  ;;  %v467_v15 = vmul.f32 %v1092_v26, %v450_v58  ;;  %v208_v24 = vmul.f32 %v1065_v8, %v191_v21  ;;  %v260_v59 = vmul.f32 %v1067_v9, %v243_v41  ;;  %v192_v35 = vld [vmem:[#allocation6 + $0x160] sm:$0xff]  ;;  %v658_v21 = vld [vmem:[#allocation6 + $0x5d0] sm:$0xff] }
  0x7a   :  { %v793_v27 = vadd.f32 %v777_v38, %v741_v2  ;;  %v586_v33 = vadd.f32 %v570_v0, %v534_v30  ;;  %v379_v49 = vadd.f32 %v363_v14, %v327_v17  ;;  %v172_v54 = vadd.f32 %v156_v19, %v104_v13  ;;  %v399_v38 = vld [vmem:[#allocation6 + $0x358] sm:$0xff]  ;;  %v244_v48 = vld [vmem:[#allocation6 + $0x1e0] sm:$0xff]  ;;  %v814_v17 = vld [vmem:[#allocation6 + $0x750] sm:$0xff] }
  0x7b   :  { %v726_v36 = vmul.f32 %v1113_v47, %v709_v40  ;;  %v778_v32 = vmul.f32 %v1122_v55, %v761_v6  ;;  %v519_v45 = vmul.f32 %v1095_v28, %v502_v46  ;;  %v312_v57 = vmul.f32 %v1074_v12, %v295_v23  ;;  %v762_v6 = vld [vmem:[#allocation6 + $0x6d0] sm:$0xff]  ;;  %v296_v23 = vld [vmem:[#allocation6 + $0x260] sm:$0xff] }
  0x7c   :  { %v845_v50 = vadd.f32 %v829_v11, %v793_v27  ;;  %v638_v25 = vadd.f32 %v622_v7, %v586_v33  ;;  %v431_v29 = vadd.f32 %v415_v10, %v379_v49  ;;  %v224_v60 = vadd.f32 %v208_v24, %v172_v54  ;;  %v710_v11 = vld [vmem:[#allocation6 + $0x650] sm:$0xff]  ;;  %v451_v10 = vld [vmem:[#allocation6 + $0x3d8] sm:$0xff] }
  0x7d   :  { %v830_v0 = vmul.f32 %v1125_v61, %v813_v18  ;;  %v882_v62 = vmul.f32 %v1132_v5, %v865_v22  ;;  %v571_v52 = vmul.f32 %v1099_v31, %v554_v34  ;;  %v364_v51 = vmul.f32 %v1079_v16, %v347_v53  ;;  %v866_v22 = vld [vmem:[#allocation6 + $0x7d0] sm:$0xff]  ;;  %v555_v54 = vld [vmem:[#allocation6 + $0x4d8] sm:$0xff]  ;;  %v348_v53 = vld [vmem:[#allocation6 + $0x2e0] sm:$0xff] }
  0x7e   :  { %v897_v56 = vadd.f32 %v881_v43, %v845_v50  ;;  %v690_v14 = vadd.f32 %v674_v44, %v638_v25  ;;  %v483_v58 = vadd.f32 %v467_v15, %v431_v29  ;;  %v276_v41 = vadd.f32 %v260_v59, %v224_v60  ;;  %v503_v15 = vld [vmem:[#allocation6 + $0x458] sm:$0xff] }
  0x7f   :  { %v623_v7 = vmul.f32 %v1103_v37, %v606_v42  ;;  %v416_v40 = vmul.f32 %v1084_v20, %v399_v38  ;;  %v105_v13 = vmul.f32 %v1057_v3, %v88_v1  ;;  %v157_v2 = vmul.f32 %v1059_v4, %v140_v63  ;;  %v607_v42 = vld [vmem:[#allocation6 + $0x558] sm:$0xff]  ;;  %v400_v38 = vld [vmem:[#allocation6 + $0x360] sm:$0xff]  ;;  %v89_v1 = vld [vmem:[#allocation6 + $0x68] sm:$0xff] }
  0x80   :  { %948 = vst [vmem:[%s1451_s2 + $0x40] sm:$0xff] %v897_v56  ;;  %v742_v43 = vadd.f32 %v726_v36, %v690_v14  ;;  %v535_v30 = vadd.f32 %v519_v45, %v483_v58  ;;  %v328_v46 = vadd.f32 %v312_v57, %v276_v41  ;;  %v209_v19 = vmul.f32 %v1065_v8, %v192_v35  ;;  %v141_v63 = vld [vmem:[#allocation6 + $0xe8] sm:$0xff]  ;;  %v659_v35 = vld [vmem:[#allocation6 + $0x5d8] sm:$0xff] }
  0x81   :  { %v675_v44 = vmul.f32 %v1106_v39, %v658_v21  ;;  %v727_v18 = vmul.f32 %v1113_v47, %v710_v11  ;;  %v173_v24 = vadd.f32 %v157_v2, %v105_v13  ;;  %v261_v59 = vmul.f32 %v1067_v9, %v244_v48  ;;  %v193_v58 = vld [vmem:[#allocation6 + $0x168] sm:$0xff]  ;;  %v452_v48 = vld [vmem:[#allocation6 + $0x3e0] sm:$0xff] }
  0x82   :  { %v794_v27 = vadd.f32 %v778_v32, %v742_v43  ;;  %v587_v33 = vadd.f32 %v571_v52, %v535_v30  ;;  %v380_v49 = vadd.f32 %v364_v51, %v328_v46  ;;  %v468_v34 = vmul.f32 %v1092_v26, %v451_v10  ;;  %v763_v10 = vld [vmem:[#allocation6 + $0x6d8] sm:$0xff]  ;;  %v504_v46 = vld [vmem:[#allocation6 + $0x460] sm:$0xff] }
  0x83   :  { %v779_v36 = vmul.f32 %v1122_v55, %v762_v6  ;;  %v831_v45 = vmul.f32 %v1125_v61, %v814_v17  ;;  %v225_v57 = vadd.f32 %v209_v19, %v173_v24  ;;  %v313_v50 = vmul.f32 %v1074_v12, %v296_v23  ;;  %v297_v23 = vld [vmem:[#allocation6 + $0x268] sm:$0xff] }
  0x84   :  { %v846_v25 = vadd.f32 %v830_v0, %v794_v27  ;;  %v639_v29 = vadd.f32 %v623_v7, %v587_v33  ;;  %v432_v60 = vadd.f32 %v416_v40, %v380_v49  ;;  %v520_v32 = vmul.f32 %v1095_v28, %v503_v15  ;;  %v245_v7 = vld [vmem:[#allocation6 + $0x1e8] sm:$0xff]  ;;  %v711_v40 = vld [vmem:[#allocation6 + $0x658] sm:$0xff] }
  0x85   :  { %v883_v52 = vmul.f32 %v1132_v5, %v866_v22  ;;  %v572_v51 = vmul.f32 %v1099_v31, %v555_v54  ;;  %v277_v56 = vadd.f32 %v261_v59, %v225_v57  ;;  %v365_v14 = vmul.f32 %v1079_v16, %v348_v53  ;;  %v867_v15 = vld [vmem:[#allocation6 + $0x7d8] sm:$0xff]  ;;  %v556_v54 = vld [vmem:[#allocation6 + $0x4e0] sm:$0xff]  ;;  %v349_v53 = vld [vmem:[#allocation6 + $0x2e8] sm:$0xff] }
  0x86   :  { %v898_v21 = vadd.f32 %v882_v62, %v846_v25  ;;  %v691_v11 = vadd.f32 %v675_v44, %v639_v29  ;;  %v484_v41 = vadd.f32 %v468_v34, %v432_v60  ;;  %v624_v0 = vmul.f32 %v1103_v37, %v607_v42  ;;  %v815_v44 = vld [vmem:[#allocation6 + $0x758] sm:$0xff]  ;;  %v401_v60 = vld [vmem:[#allocation6 + $0x368] sm:$0xff] }
  0x87   :  { %v329_v13 = vadd.f32 %v313_v50, %v277_v56  ;;  %v417_v2 = vmul.f32 %v1084_v20, %v400_v38  ;;  %v106_v43 = vmul.f32 %v1057_v3, %v89_v1  ;;  %v158_v30 = vmul.f32 %v1059_v4, %v141_v63  ;;  %v608_v50 = vld [vmem:[#allocation6 + $0x560] sm:$0xff]  ;;  %v90_v63 = vld [vmem:[#allocation6 + $0x70] sm:$0xff] }
  0x88   :  { %949 = vst [vmem:[%s1451_s2 + $0x48] sm:$0xff] %v898_v21  ;;  %v743_v62 = vadd.f32 %v727_v18, %v691_v11  ;;  %v536_v6 = vadd.f32 %v520_v32, %v484_v41  ;;  %v676_v17 = vmul.f32 %v1106_v39, %v659_v35  ;;  %v210_v19 = vmul.f32 %v1065_v8, %v193_v58  ;;  %v453_v11 = vld [vmem:[#allocation6 + $0x3e8] sm:$0xff]  ;;  %v194_v41 = vld [vmem:[#allocation6 + $0x170] sm:$0xff] }
  0x89   :  { %v381_v24 = vadd.f32 %v365_v14, %v329_v13  ;;  %v469_v59 = vmul.f32 %v1092_v26, %v452_v48  ;;  %v174_v27 = vadd.f32 %v158_v30, %v106_v43  ;;  %v262_v33 = vmul.f32 %v1067_v9, %v245_v7  ;;  %v660_v14 = vld [vmem:[#allocation6 + $0x5e0] sm:$0xff]  ;;  %v505_v30 = vld [vmem:[#allocation6 + $0x468] sm:$0xff] }
  0x8a   :  { %v795_v22 = vadd.f32 %v779_v36, %v743_v62  ;;  %v588_v49 = vadd.f32 %v572_v51, %v536_v6  ;;  %v728_v34 = vmul.f32 %v1113_v47, %v711_v40  ;;  %v780_v18 = vmul.f32 %v1122_v55, %v763_v10  ;;  %v142_v51 = vld [vmem:[#allocation6 + $0xf0] sm:$0xff]  ;;  %v712_v13 = vld [vmem:[#allocation6 + $0x660] sm:$0xff] }
  0x8b   :  { %v433_v42 = vadd.f32 %v417_v2, %v381_v24  ;;  %v521_v57 = vmul.f32 %v1095_v28, %v504_v46  ;;  %v226_v25 = vadd.f32 %v210_v19, %v174_v27  ;;  %v314_v29 = vmul.f32 %v1074_v12, %v297_v23  ;;  %v246_v40 = vld [vmem:[#allocation6 + $0x1f0] sm:$0xff]  ;;  %v764_v2 = vld [vmem:[#allocation6 + $0x6e0] sm:$0xff]  ;;  %v557_v27 = vld [vmem:[#allocation6 + $0x4e8] sm:$0xff] }
  0x8c   :  { %v847_v32 = vadd.f32 %v831_v45, %v795_v22  ;;  %v640_v38 = vadd.f32 %v624_v0, %v588_v49  ;;  %v832_v1 = vmul.f32 %v1125_v61, %v815_v44  ;;  %v884_v36 = vmul.f32 %v1132_v5, %v867_v15  ;;  %v298_v23 = vld [vmem:[#allocation6 + $0x270] sm:$0xff]  ;;  %v816_v15 = vld [vmem:[#allocation6 + $0x760] sm:$0xff] }
  0x8d   :  { %v485_v35 = vadd.f32 %v469_v59, %v433_v42  ;;  %v573_v56 = vmul.f32 %v1099_v31, %v556_v54  ;;  %v278_v58 = vadd.f32 %v262_v33, %v226_v25  ;;  %v366_v21 = vmul.f32 %v1079_v16, %v349_v53  ;;  %v868_v24 = vld [vmem:[#allocation6 + $0x7e0] sm:$0xff]  ;;  %v350_v42 = vld [vmem:[#allocation6 + $0x2f0] sm:$0xff]  ;;  %v609_v25 = vld [vmem:[#allocation6 + $0x568] sm:$0xff] }
  0x8e   :  { %v899_v48 = vadd.f32 %v883_v52, %v847_v32  ;;  %v692_v7 = vadd.f32 %v676_v17, %v640_v38  ;;  %v625_v45 = vmul.f32 %v1103_v37, %v608_v50  ;;  %v418_v0 = vmul.f32 %v1084_v20, %v401_v60  ;;  %v402_v32 = vld [vmem:[#allocation6 + $0x370] sm:$0xff]  ;;  %v91_v38 = vld [vmem:[#allocation6 + $0x78] sm:$0xff] }
  0x8f   :  { %v537_v10 = vadd.f32 %v521_v57, %v485_v35  ;;  %v330_v43 = vadd.f32 %v314_v29, %v278_v58  ;;  %v107_v62 = vmul.f32 %v1057_v3, %v90_v63  ;;  %v159_v6 = vmul.f32 %v1059_v4, %v142_v51 }
  0x90   :  { %950 = vst [vmem:[%s1451_s2 + $0x50] sm:$0xff] %v899_v48  ;;  %v744_v52 = vadd.f32 %v728_v34, %v692_v7  ;;  %v677_v17 = vmul.f32 %v1106_v39, %v660_v14  ;;  %v470_v46 = vmul.f32 %v1092_v26, %v453_v11  ;;  %v211_v19 = vmul.f32 %v1065_v8, %v194_v41  ;;  %v143_v14 = vld [vmem:[#allocation6 + $0xf8] sm:$0xff]  ;;  %v454_v48 = vld [vmem:[#allocation6 + $0x3f0] sm:$0xff] }
  0x91   :  { %v589_v44 = vadd.f32 %v573_v56, %v537_v10  ;;  %v382_v59 = vadd.f32 %v366_v21, %v330_v43  ;;  %v175_v33 = vadd.f32 %v159_v6, %v107_v62  ;;  %v263_v22 = vmul.f32 %v1067_v9, %v246_v40  ;;  %v661_v56 = vld [vmem:[#allocation6 + $0x5e8] sm:$0xff]  ;;  %v195_v7 = vld [vmem:[#allocation6 + $0x178] sm:$0xff]  ;;  %v506_v62 = vld [vmem:[#allocation6 + $0x470] sm:$0xff] }
  0x92   :  { %v796_v49 = vadd.f32 %v780_v18, %v744_v52  ;;  %v729_v54 = vmul.f32 %v1113_v47, %v712_v13  ;;  %v781_v34 = vmul.f32 %v1122_v55, %v764_v2  ;;  %v522_v53 = vmul.f32 %v1095_v28, %v505_v30  ;;  %v713_v43 = vld [vmem:[#allocation6 + $0x668] sm:$0xff]  ;;  %v299_v52 = vld [vmem:[#allocation6 + $0x278] sm:$0xff] }
  0x93   :  { %v641_v57 = vadd.f32 %v625_v45, %v589_v44  ;;  %v434_v50 = vadd.f32 %v418_v0, %v382_v59  ;;  %v227_v29 = vadd.f32 %v211_v19, %v175_v33  ;;  %v315_v60 = vmul.f32 %v1074_v12, %v298_v23  ;;  %v247_v45 = vld [vmem:[#allocation6 + $0x1f8] sm:$0xff]  ;;  %v765_v44 = vld [vmem:[#allocation6 + $0x6e8] sm:$0xff] }
  0x94   :  { %v848_v63 = vadd.f32 %v832_v1, %v796_v49  ;;  %v833_v51 = vmul.f32 %v1125_v61, %v816_v15  ;;  %v885_v18 = vmul.f32 %v1132_v5, %v868_v24  ;;  %v574_v35 = vmul.f32 %v1099_v31, %v557_v27  ;;  %v558_v24 = vld [vmem:[#allocation6 + $0x4f0] sm:$0xff] }
  0x95   :  { %v693_v58 = vadd.f32 %v677_v17, %v641_v57  ;;  %v486_v21 = vadd.f32 %v470_v46, %v434_v50  ;;  %v279_v11 = vadd.f32 %v263_v22, %v227_v29  ;;  %v367_v41 = vmul.f32 %v1079_v16, %v350_v42 }
  0x96   :  { %v900_v0 = vadd.f32 %v884_v36, %v848_v63  ;;  %v626_v40 = vmul.f32 %v1103_v37, %v609_v25  ;;  %v419_v1 = vmul.f32 %v1084_v20, %v402_v32  ;;  %v108_v10 = vmul.f32 %v1057_v3, %v91_v38  ;;  %v403_v25 = vld [vmem:[#allocation6 + $0x378] sm:$0xff]  ;;  %v869_v32 = vld [vmem:[#allocation6 + $0x7e8] sm:$0xff]  ;;  %v662_v63 = vld [vmem:[#allocation6 + $0x5f0] sm:$0xff] }
  0x97   :  { %v745_v13 = vadd.f32 %v729_v54, %v693_v58  ;;  %v538_v2 = vadd.f32 %v522_v53, %v486_v21  ;;  %v331_v30 = vadd.f32 %v315_v60, %v279_v11  ;;  %v160_v6 = vmul.f32 %v1059_v4, %v143_v14  ;;  %v351_v4 = vld [vmem:[#allocation6 + $0x2f8] sm:$0xff]  ;;  %v817_v53 = vld [vmem:[#allocation6 + $0x768] sm:$0xff]  ;;  %v714_v21 = vld [vmem:[#allocation6 + $0x670] sm:$0xff] }
  0x98   :  { %951 = vst [vmem:[%s1451_s2 + $0x58] sm:$0xff] %v900_v0  ;;  %v678_v36 = vmul.f32 %v1106_v39, %v661_v56  ;;  %v471_v17 = vmul.f32 %v1092_v26, %v454_v48  ;;  %v212_v46 = vmul.f32 %v1065_v8, %v195_v7  ;;  %v264_v3 = vmul.f32 %v1067_v9, %v247_v45  ;;  %v610_v8 = vld [vmem:[#allocation6 + $0x570] sm:$0xff]  ;;  %v455_v56 = vld [vmem:[#allocation6 + $0x3f8] sm:$0xff] }
  0x99   :  { %v797_v19 = vadd.f32 %v781_v34, %v745_v13  ;;  %v590_v23 = vadd.f32 %v574_v35, %v538_v2  ;;  %v383_v15 = vadd.f32 %v367_v41, %v331_v30  ;;  %v176_v59 = vadd.f32 %v160_v6, %v108_v10  ;;  %v507_v48 = vld [vmem:[#allocation6 + $0x478] sm:$0xff]  ;;  %v766_v0 = vld [vmem:[#allocation6 + $0x6f0] sm:$0xff] }
  0x9a   :  { %v730_v27 = vmul.f32 %v1113_v47, %v713_v43  ;;  %v523_v33 = vmul.f32 %v1095_v28, %v506_v62  ;;  %v316_v22 = vmul.f32 %v1074_v12, %v299_v52  ;;  %v782_v9 = vmul.f32 %v1122_v55, %v765_v44  ;;  %v559_v13 = vld [vmem:[#allocation6 + $0x4f8] sm:$0xff]  ;;  %v818_v6 = vld [vmem:[#allocation6 + $0x770] sm:$0xff] }
  0x9b   :  { %v849_v49 = vadd.f32 %v833_v51, %v797_v19  ;;  %v642_v54 = vadd.f32 %v626_v40, %v590_v23  ;;  %v435_v42 = vadd.f32 %v419_v1, %v383_v15  ;;  %v228_v57 = vadd.f32 %v212_v46, %v176_v59  ;;  %v611_v52 = vld [vmem:[#allocation6 + $0x578] sm:$0xff]  ;;  %v870_v19 = vld [vmem:[#allocation6 + $0x7f0] sm:$0xff] }
  0x9c   :  { %v575_v34 = vmul.f32 %v1099_v31, %v558_v24  ;;  %v368_v50 = vmul.f32 %v1079_v16, %v351_v4  ;;  %v834_v12 = vmul.f32 %v1125_v61, %v817_v53  ;;  %v627_v51 = vmul.f32 %v1103_v37, %v610_v8  ;;  %v663_v23 = vld [vmem:[#allocation6 + $0x5f8] sm:$0xff] }
  0x9d   :  { %v901_v29 = vadd.f32 %v885_v18, %v849_v49  ;;  %v694_v60 = vadd.f32 %v678_v36, %v642_v54  ;;  %v487_v38 = vadd.f32 %v471_v17, %v435_v42  ;;  %v280_v35 = vadd.f32 %v264_v3, %v228_v57  ;;  %v715_v24 = vld [vmem:[#allocation6 + $0x678] sm:$0xff] }
  0x9e   :  { %v420_v18 = vmul.f32 %v1084_v20, %v403_v25  ;;  %v886_v11 = vmul.f32 %v1132_v5, %v869_v32  ;;  %v679_v41 = vmul.f32 %v1106_v39, %v662_v63  ;;  %v472_v1 = vmul.f32 %v1092_v26, %v455_v56  ;;  %v819_v53 = vld [vmem:[#allocation6 + $0x778] sm:$0xff] }
  0x9f   :  { %952 = vst [vmem:[%s1451_s2 + $0x60] sm:$0xff] %v901_v29  ;;  %v746_v14 = vadd.f32 %v730_v27, %v694_v60  ;;  %v539_v58 = vadd.f32 %v523_v33, %v487_v38  ;;  %v332_v16 = vadd.f32 %v316_v22, %v280_v35  ;;  %v731_v10 = vmul.f32 %v1113_v47, %v714_v21 }
  0xa0   :  { %v524_v62 = vmul.f32 %v1095_v28, %v507_v48  ;;  %v783_v20 = vmul.f32 %v1122_v55, %v766_v0  ;;  %v576_v3 = vmul.f32 %v1099_v31, %v559_v13  ;;  %v835_v44 = vmul.f32 %v1125_v61, %v818_v6  ;;  %v767_v31 = vld [vmem:[#allocation6 + $0x6f8] sm:$0xff] }
  0xa1   :  { %v798_v7 = vadd.f32 %v782_v9, %v746_v14  ;;  %v591_v45 = vadd.f32 %v575_v34, %v539_v58  ;;  %v384_v40 = vadd.f32 %v368_v50, %v332_v16  ;;  %v628_v28 = vmul.f32 %v1103_v37, %v611_v52  ;;  %v871_v9 = vld [vmem:[#allocation6 + $0x7f8] sm:$0xff] }
  0xa2   :  { %v887_v4 = vmul.f32 %v1132_v5, %v870_v19  ;;  %v680_v33 = vmul.f32 %v1106_v39, %v663_v23  ;;  %v732_v54 = vmul.f32 %v1113_v47, %v715_v24  ;;  %v784_v57 = vmul.f32 %v1122_v55, %v767_v31 }
  0xa3   :  { %v850_v2 = vadd.f32 %v834_v12, %v798_v7  ;;  %v643_v43 = vadd.f32 %v627_v51, %v591_v45  ;;  %v436_v30 = vadd.f32 %v420_v18, %v384_v40  ;;  %v836_v34 = vmul.f32 %v1125_v61, %v819_v53 }
  0xa4   :  { %v888_v39 = vmul.f32 %v1132_v5, %v871_v9 }
  0xa5   :  { %v902_v36 = vadd.f32 %v886_v11, %v850_v2  ;;  %v695_v17 = vadd.f32 %v679_v41, %v643_v43  ;;  %v488_v46 = vadd.f32 %v472_v1, %v436_v30 }
  0xa7   :  { %953 = vst [vmem:[%s1451_s2 + $0x68] sm:$0xff] %v902_v36  ;;  %v747_v26 = vadd.f32 %v731_v10, %v695_v17  ;;  %v540_v15 = vadd.f32 %v524_v62, %v488_v46 }
  0xa9   :  { %v799_v59 = vadd.f32 %v783_v20, %v747_v26  ;;  %v592_v27 = vadd.f32 %v576_v3, %v540_v15 }
  0xab   :  { %v851_v22 = vadd.f32 %v835_v44, %v799_v59  ;;  %v644_v49 = vadd.f32 %v628_v28, %v592_v27 }
  0xad   :  { %v903_v42 = vadd.f32 %v887_v4, %v851_v22  ;;  %v696_v8 = vadd.f32 %v680_v33, %v644_v49 }
  0xaf   :  { %954 = vst [vmem:[%s1451_s2 + $0x70] sm:$0xff] %v903_v42  ;;  %v748_v37 = vadd.f32 %v732_v54, %v696_v8 }
  0xb1   :  { %v800_v50 = vadd.f32 %v784_v57, %v748_v37 }
  0xb3   :  { %v852_v25 = vadd.f32 %v836_v34, %v800_v50 }
  0xb5   :  { %v904_v29 = vadd.f32 %v888_v39, %v852_v25 }
  0xb7   :  { %955 = vst [vmem:[%s1451_s2 + $0x78] sm:$0xff] %v904_v29 }
  0xb8   :  { %960 = vsyncpa [#allocation4], 1 }
  0xb9   :  { %961 = vsyncpa [#allocation5], 1 }

</bundles_post_ra>
